<compile_context>
chip_gen: v7x
topology: tpu7x:2x2x1
jax: 0.10.0
libtpu: 0.0.40
codegen_flags: <defaults>
</compile_context>

<pallas_src>
import functools
import math

import jax
import jax.numpy as jnp
from jax import lax
from jax.experimental import pallas as pl
from jax.experimental.pallas import tpu as pltpu

# Large finite negative instead of -inf: identical softmax result when at least
# one key is unmasked, and avoids NaN rows in the degenerate fully-masked case.
_NEG_INF = -1e30
_PREC = lax.Precision.HIGHEST


def _fused_mha_kernel(x_ref, kv_ref, wq_ref, bq_ref, wkv_ref, bkv_ref,
                      wo_ref, bo_ref, *rest,
                      batch: int, q_len: int, kv_len: int,
                      num_heads: int, head_dim: int,
                      causal: bool, has_key_mask: bool):
    # x_ref: (B*Lq, E), kv_ref: (B*Lk, E)
    # wq_ref: (E, E), bq_ref: (1, E)           (softmax scale pre-folded)
    # wkv_ref: (E, 2E), bkv_ref: (1, 2E)       (K|V fused)
    # wo_ref: (E, E), bo_ref: (1, E)
    # optional keybias_ref: (B, Lk) additive (0 / -1e30); o_ref: (B*Lq, E)
    if has_key_mask:
        keybias_ref, o_ref = rest
    else:
        (o_ref,) = rest

    E = num_heads * head_dim
    x = x_ref[...]       # (B*Lq, E) f32
    kvx = kv_ref[...]    # (B*Lk, E) f32

    # Fused projections on the MXU, f32 accumulate.  One 64-lane push for Q,
    # one 128-lane push for K|V.
    q = jnp.dot(x, wq_ref[...], preferred_element_type=jnp.float32,
                precision=_PREC) + bq_ref[...]                     # (B*Lq, E)
    kvp = jnp.dot(kvx, wkv_ref[...], preferred_element_type=jnp.float32,
                  precision=_PREC) + bkv_ref[...]                  # (B*Lk, 2E)
    k = kvp[:, :E]
    v = kvp[:, E:]

    # Causal bias built in-kernel (no HBM round-trip, no extra DMA stream).
    if causal:
        row = lax.broadcasted_iota(jnp.int32, (q_len, kv_len), 0)
        col = lax.broadcasted_iota(jnp.int32, (q_len, kv_len), 1)
        causal_bias = jnp.where(col > row, _NEG_INF, 0.0).astype(jnp.float32)

    if has_key_mask:
        key_bias_all = keybias_ref[...]          # (B, Lk)

    bo = bo_ref[...]                             # (1, E)
    wo = wo_ref[...]                             # (E, E)

    # Static unroll over (batch, head): batches/heads never mix, so each pair is
    # an independent tiny attention problem on sublane/lane slices.
    for b in range(batch):
        q_b = q[b * q_len:(b + 1) * q_len, :]    # (Lq, E)
        k_b = k[b * kv_len:(b + 1) * kv_len, :]  # (Lk, E)
        v_b = v[b * kv_len:(b + 1) * kv_len, :]  # (Lk, E)
        if has_key_mask:
            keyb = key_bias_all[b:b + 1, :]      # (1, Lk), broadcasts over rows

        acc = jnp.broadcast_to(bo, (q_len, E))   # init with out-proj bias

        for h in range(num_heads):
            lo = h * head_dim
            qh = q_b[:, lo:lo + head_dim]        # (Lq, Dh) static lane slice
            kh = k_b[:, lo:lo + head_dim]        # (Lk, Dh)
            vh = v_b[:, lo:lo + head_dim]        # (Lk, Dh)

            # scores = qh @ kh^T without materializing a transpose.
            s = lax.dot_general(qh, kh,
                                dimension_numbers=(((1,), (1,)), ((), ())),
                                preferred_element_type=jnp.float32,
                                precision=_PREC)                    # (Lq, Lk)
            if causal:
                s = s + causal_bias
            if has_key_mask:
                s = s + keyb

            # softmax over keys (all f32; exact reciprocal for PyTorch parity)
            m = jnp.max(s, axis=-1, keepdims=True)
            p = jnp.exp(s - m)
            denom = jnp.sum(p, axis=-1, keepdims=True)
            attn = p / denom

            oh = jnp.dot(attn, vh, preferred_element_type=jnp.float32,
                         precision=_PREC)                           # (Lq, Dh)
            # Per-head slice of the output projection: accumulate instead of
            # concatenating heads (removes the lane-concat relayout).
            acc = acc + jnp.dot(oh, wo[lo:lo + head_dim, :],
                                preferred_element_type=jnp.float32,
                                precision=_PREC)                    # (Lq, E)

        o_ref[b * q_len:(b + 1) * q_len, :] = acc.astype(o_ref.dtype)


class AttentionLayerPallas:
    """JAX/Pallas port of the PyTorch AttentionLayer (eval-mode forward)."""

    def __init__(self, hidden_size=64, num_heads=4, masking=True, key=None):
        assert hidden_size % num_heads == 0
        self.hidden_size = hidden_size
        self.num_heads = num_heads
        self.head_dim = hidden_size // num_heads
        self.masking = masking

        if key is None:
            key = jax.random.PRNGKey(42)
        k1, k2, k3, k4 = jax.random.split(key, 4)
        E = hidden_size
        # nn.MultiheadAttention parameters: in_proj (3E, E) weight + (3E,) bias,
        # out_proj Linear(E, E) weight + bias.  Deterministic synthetic init.
        in_proj_weight = jax.random.normal(k1, (3 * E, E), jnp.float32) * 0.05
        in_proj_bias = jax.random.normal(k2, (3 * E,), jnp.float32) * 0.05
        out_proj_weight = jax.random.normal(k3, (E, E), jnp.float32) * 0.05
        out_proj_bias = jax.random.normal(k4, (E,), jnp.float32) * 0.05

        wq, wk, wv = jnp.split(in_proj_weight, 3, axis=0)
        bq, bk, bv = jnp.split(in_proj_bias, 3, axis=0)
        scale = 1.0 / math.sqrt(self.head_dim)

        # Pre-transpose for x @ W layouts; fold the softmax scale into the Q proj.
        self.wq_t = (wq.T * scale).astype(jnp.float32)              # (E, E)
        self.bq = (bq * scale).reshape(1, E).astype(jnp.float32)    # (1, E)
        self.wk_t = wk.T.astype(jnp.float32)                        # (E, E) (reference)
        self.bk = bk.reshape(1, E).astype(jnp.float32)
        self.wv_t = wv.T.astype(jnp.float32)
        self.bv = bv.reshape(1, E).astype(jnp.float32)
        # Fused K|V projection: one (E, 2E) matmul -> full 128-lane MXU push.
        self.w_kv = jnp.concatenate([self.wk_t, self.wv_t], axis=1)  # (E, 2E)
        self.b_kv = jnp.concatenate([self.bk, self.bv], axis=1)      # (1, 2E)
        self.wo_t = out_proj_weight.T.astype(jnp.float32)            # (E, E)
        self.bo = out_proj_bias.reshape(1, E).astype(jnp.float32)    # (1, E)

    def __call__(self, x_in, kv_in, key_mask=None):
        # x_in: (B, Lq, E), kv_in: (B, Lk, E)
        # key_mask: optional bool (B, Lk), True = ignore that key.
        B, Lq, E = x_in.shape
        Lk = kv_in.shape[1]
        has_key_mask = key_mask is not None

        # Stack the batch along sublanes: one grid step, one DMA stream per array.
        x2d = x_in.reshape(B * Lq, E)
        kv2d = kv_in.reshape(B * Lk, E)

        def full(shape):
            return pl.BlockSpec(shape, lambda i, _s=shape: (0,) * len(_s))

        args = [x2d, kv2d,
                self.wq_t, self.bq, self.w_kv, self.b_kv, self.wo_t, self.bo]
        in_specs = [full((B * Lq, E)), full((B * Lk, E)),
                    full((E, E)), full((1, E)),
                    full((E, 2 * E)), full((1, 2 * E)),
                    full((E, E)), full((1, E))]
        if has_key_mask:
            key_bias = jnp.where(key_mask, _NEG_INF, 0.0).astype(jnp.float32)  # (B, Lk)
            args.append(key_bias)
            in_specs.append(full((B, Lk)))

        kernel = functools.partial(
            _fused_mha_kernel,
            batch=B, q_len=Lq, kv_len=Lk,
            num_heads=self.num_heads, head_dim=self.head_dim,
            causal=bool(self.masking), has_key_mask=has_key_mask)

        out2d = pl.pallas_call(
            kernel,
            out_shape=jax.ShapeDtypeStruct((B * Lq, E), jnp.float32),
            grid_spec=pltpu.PrefetchScalarGridSpec(
                num_scalar_prefetch=0,
                grid=(1,),
                in_specs=in_specs,
                out_specs=full((B * Lq, E)),
            ),
            compiler_params=pltpu.CompilerParams(
                dimension_semantics=("arbitrary",)),
        )(*args)
        return out2d.reshape(B, Lq, E)

    # Pure-JAX reference (eval-mode nn.MultiheadAttention semantics) for checking.
    def reference_forward(self, x_in, kv_in, key_mask=None):
        B, Lq, E = x_in.shape
        Lk = kv_in.shape[1]
        H, Dh = self.num_heads, self.head_dim
        q = (jnp.dot(x_in, self.wq_t, precision=_PREC) + self.bq
             ).reshape(B, Lq, H, Dh).transpose(0, 2, 1, 3)
        k = (jnp.dot(kv_in, self.wk_t, precision=_PREC) + self.bk
             ).reshape(B, Lk, H, Dh).transpose(0, 2, 1, 3)
        v = (jnp.dot(kv_in, self.wv_t, precision=_PREC) + self.bv
             ).reshape(B, Lk, H, Dh).transpose(0, 2, 1, 3)
        s = jnp.einsum("bhqd,bhkd->bhqk", q, k, precision=_PREC)  # scale folded in Wq
        if self.masking:
            row = jnp.arange(Lq)[:, None]
            col = jnp.arange(Lk)[None, :]
            s = s + jnp.where(col > row, _NEG_INF, 0.0)
        if key_mask is not None:
            s = s + jnp.where(key_mask, _NEG_INF, 0.0)[:, None, None, :]
        p = jax.nn.softmax(s, axis=-1)
        o = jnp.einsum("bhqk,bhkd->bhqd", p, v,
                       precision=_PREC).transpose(0, 2, 1, 3).reshape(B, Lq, E)
        return jnp.dot(o, self.wo_t, precision=_PREC) + self.bo


if __name__ == "__main__":
    # Small shapes consistent with the module's defaults-style usage.
    B, Lq, Lk = 2, 8, 8
    hidden_size, num_heads = 64, 4

    key = jax.random.PRNGKey(0)
    kx, kkv, kparams = jax.random.split(key, 3)
    x_in = jax.random.normal(kx, (B, Lq, hidden_size), jnp.float32)
    kv_in = jax.random.normal(kkv, (B, Lk, hidden_size), jnp.float32)

    layer = AttentionLayerPallas(hidden_size=hidden_size, num_heads=num_heads,
                                 masking=True, key=kparams)

    # Case 1: causal mask only (matches AttentionLayer.forward with key_mask=None).
    out = layer(x_in, kv_in, key_mask=None)
    jax.block_until_ready(out)
    assert out.shape == (B, Lq, hidden_size)
    ref = layer.reference_forward(x_in, kv_in, key_mask=None)
    max_err = float(jnp.max(jnp.abs(out - ref)))
    assert max_err < 1e-3, f"mismatch vs reference (no key_mask): {max_err}"

    # Case 2: causal + key-padding mask (last key of each batch ignored).
    key_mask = jnp.zeros((B, Lk), bool).at[:, Lk - 1].set(True)
    out_m = layer(x_in, kv_in, key_mask=key_mask)
    jax.block_until_ready(out_m)
    ref_m = layer.reference_forward(x_in, kv_in, key_mask=key_mask)
    max_err_m = float(jnp.max(jnp.abs(out_m - ref_m)))
    assert max_err_m < 1e-3, f"mismatch vs reference (key_mask): {max_err_m}"

    print("KERNEL_OK")
</pallas_src>

<mosaic_0001>
module attributes {stable_mosaic.version = 11 : i64} {
  func.func @_fused_mha_kernel(%arg0: i32, %arg1: memref<16x64xf32, #tpu.memory_space<vmem>>, %arg2: memref<16x64xf32, #tpu.memory_space<vmem>>, %arg3: memref<64x64xf32, #tpu.memory_space<vmem>>, %arg4: memref<1x64xf32, #tpu.memory_space<vmem>>, %arg5: memref<64x128xf32, #tpu.memory_space<vmem>>, %arg6: memref<1x128xf32, #tpu.memory_space<vmem>>, %arg7: memref<64x64xf32, #tpu.memory_space<vmem>>, %arg8: memref<1x64xf32, #tpu.memory_space<vmem>>, %arg9: memref<16x64xf32, #tpu.memory_space<vmem>>) attributes {dimension_semantics = [#tpu.dimension_semantics<arbitrary>], iteration_bounds = array<i64: 1>, scalar_prefetch = 0 : i64, scratch_operands = 0 : i64, tpu.core_type = #tpu.core_type<tc>, window_params = [{pipeline_mode = #tpu.pipeline_mode<synchronous>, transform_indices = @transform_0, window_bounds = array<i64: 16, 64>}, {pipeline_mode = #tpu.pipeline_mode<synchronous>, transform_indices = @transform_1, window_bounds = array<i64: 16, 64>}, {pipeline_mode = #tpu.pipeline_mode<synchronous>, transform_indices = @transform_2, window_bounds = array<i64: 64, 64>}, {pipeline_mode = #tpu.pipeline_mode<synchronous>, transform_indices = @transform_3, window_bounds = array<i64: 1, 64>}, {pipeline_mode = #tpu.pipeline_mode<synchronous>, transform_indices = @transform_4, window_bounds = array<i64: 64, 128>}, {pipeline_mode = #tpu.pipeline_mode<synchronous>, transform_indices = @transform_5, window_bounds = array<i64: 1, 128>}, {pipeline_mode = #tpu.pipeline_mode<synchronous>, transform_indices = @transform_6, window_bounds = array<i64: 64, 64>}, {pipeline_mode = #tpu.pipeline_mode<synchronous>, transform_indices = @transform_7, window_bounds = array<i64: 1, 64>}, {pipeline_mode = #tpu.pipeline_mode<synchronous>, transform_indices = @transform_8, window_bounds = array<i64: 16, 64>}]} {
    %c0 = arith.constant 0 : index
    %c0_0 = arith.constant 0 : index
    %0 = vector.load %arg1[%c0, %c0_0] : memref<16x64xf32, #tpu.memory_space<vmem>>, vector<16x64xf32>
    %c0_1 = arith.constant 0 : index
    %c0_2 = arith.constant 0 : index
    %1 = vector.load %arg2[%c0_1, %c0_2] : memref<16x64xf32, #tpu.memory_space<vmem>>, vector<16x64xf32>
    %c0_3 = arith.constant 0 : index
    %c0_4 = arith.constant 0 : index
    %2 = vector.load %arg3[%c0_3, %c0_4] : memref<64x64xf32, #tpu.memory_space<vmem>>, vector<64x64xf32>
    %cst = arith.constant dense<0.000000e+00> : vector<16x64xf32>
    %3 = tpu.matmul %0, %2, %cst {dimension_numbers = #tpu.dot_dimension_numbers<[1], [0], [0], [1], [0, 0, 1, 1], [], []>, precision = #tpu.contract_precision<fp32>} : vector<16x64xf32>, vector<64x64xf32>, vector<16x64xf32> -> vector<16x64xf32>
    %c0_5 = arith.constant 0 : index
    %c0_6 = arith.constant 0 : index
    %4 = vector.load %arg4[%c0_5, %c0_6] : memref<1x64xf32, #tpu.memory_space<vmem>>, vector<1x64xf32>
    %5 = vector.broadcast %4 : vector<1x64xf32> to vector<16x64xf32>
    %6 = arith.addf %3, %5 : vector<16x64xf32>
    %c0_7 = arith.constant 0 : index
    %c0_8 = arith.constant 0 : index
    %7 = vector.load %arg5[%c0_7, %c0_8] : memref<64x128xf32, #tpu.memory_space<vmem>>, vector<64x128xf32>
    %cst_9 = arith.constant dense<0.000000e+00> : vector<16x128xf32>
    %8 = tpu.matmul %1, %7, %cst_9 {dimension_numbers = #tpu.dot_dimension_numbers<[1], [0], [0], [1], [0, 0, 1, 1], [], []>, precision = #tpu.contract_precision<fp32>} : vector<16x64xf32>, vector<64x128xf32>, vector<16x128xf32> -> vector<16x128xf32>
    %c0_10 = arith.constant 0 : index
    %c0_11 = arith.constant 0 : index
    %9 = vector.load %arg6[%c0_10, %c0_11] : memref<1x128xf32, #tpu.memory_space<vmem>>, vector<1x128xf32>
    %10 = vector.broadcast %9 : vector<1x128xf32> to vector<16x128xf32>
    %11 = arith.addf %8, %10 : vector<16x128xf32>
    %12 = vector.extract_strided_slice %11 {offsets = [0, 0], sizes = [16, 64], strides = [1, 1]} : vector<16x128xf32> to vector<16x64xf32>
    %13 = vector.extract_strided_slice %11 {offsets = [0, 64], sizes = [16, 64], strides = [1, 1]} : vector<16x128xf32> to vector<16x64xf32>
    %14 = tpu.iota {dimensions = array<i32: 0>} : vector<8x8xi32>
    %15 = tpu.iota {dimensions = array<i32: 1>} : vector<8x8xi32>
    %16 = arith.cmpi sgt, %15, %14 : vector<8x8xi32>
    %cst_12 = arith.constant -1.000000e+30 : f32
    %cst_13 = arith.constant 0.000000e+00 : f32
    %17 = vector.broadcast %cst_12 : f32 to vector<8x8xf32>
    %18 = vector.broadcast %cst_13 : f32 to vector<8x8xf32>
    %19 = arith.select %16, %17, %18 : vector<8x8xi1>, vector<8x8xf32>
    %c0_14 = arith.constant 0 : index
    %c0_15 = arith.constant 0 : index
    %20 = vector.load %arg8[%c0_14, %c0_15] : memref<1x64xf32, #tpu.memory_space<vmem>>, vector<1x64xf32>
    %c0_16 = arith.constant 0 : index
    %c0_17 = arith.constant 0 : index
    %21 = vector.load %arg7[%c0_16, %c0_17] : memref<64x64xf32, #tpu.memory_space<vmem>>, vector<64x64xf32>
    %22 = vector.extract_strided_slice %6 {offsets = [0, 0], sizes = [8, 64], strides = [1, 1]} : vector<16x64xf32> to vector<8x64xf32>
    %23 = vector.extract_strided_slice %12 {offsets = [0, 0], sizes = [8, 64], strides = [1, 1]} : vector<16x64xf32> to vector<8x64xf32>
    %24 = vector.extract_strided_slice %13 {offsets = [0, 0], sizes = [8, 64], strides = [1, 1]} : vector<16x64xf32> to vector<8x64xf32>
    %25 = vector.shape_cast %20 : vector<1x64xf32> to vector<1x64xf32>
    %26 = vector.broadcast %25 : vector<1x64xf32> to vector<8x64xf32>
    %27 = vector.extract_strided_slice %22 {offsets = [0, 0], sizes = [8, 16], strides = [1, 1]} : vector<8x64xf32> to vector<8x16xf32>
    %28 = vector.extract_strided_slice %23 {offsets = [0, 0], sizes = [8, 16], strides = [1, 1]} : vector<8x64xf32> to vector<8x16xf32>
    %29 = vector.extract_strided_slice %24 {offsets = [0, 0], sizes = [8, 16], strides = [1, 1]} : vector<8x64xf32> to vector<8x16xf32>
    %cst_18 = arith.constant dense<0.000000e+00> : vector<8x8xf32>
    %30 = tpu.matmul %27, %28, %cst_18 {dimension_numbers = #tpu.dot_dimension_numbers<[1], [1], [0], [0], [0, 0, 1, 0], [], []>, precision = #tpu.contract_precision<fp32>} : vector<8x16xf32>, vector<8x16xf32>, vector<8x8xf32> -> vector<8x8xf32>
    %31 = arith.addf %30, %19 : vector<8x8xf32>
    %cst_19 = arith.constant dense<0xFF800000> : vector<8xf32>
    %32 = vector.multi_reduction <maximumf>, %31, %cst_19 [1] : vector<8x8xf32> to vector<8xf32>
    %33 = vector.shape_cast %32 : vector<8xf32> to vector<8x1xf32>
    %34 = vector.broadcast %33 : vector<8x1xf32> to vector<8x8xf32>
    %35 = arith.subf %31, %34 : vector<8x8xf32>
    %36 = math.exp %35 : vector<8x8xf32>
    %cst_20 = arith.constant dense<0.000000e+00> : vector<8xf32>
    %37 = vector.multi_reduction <add>, %36, %cst_20 [1] : vector<8x8xf32> to vector<8xf32>
    %38 = vector.shape_cast %37 : vector<8xf32> to vector<8x1xf32>
    %39 = vector.broadcast %38 : vector<8x1xf32> to vector<8x8xf32>
    %40 = arith.divf %36, %39 : vector<8x8xf32>
    %cst_21 = arith.constant dense<0.000000e+00> : vector<8x16xf32>
    %41 = tpu.matmul %40, %29, %cst_21 {dimension_numbers = #tpu.dot_dimension_numbers<[1], [0], [0], [1], [0, 0, 1, 1], [], []>, precision = #tpu.contract_precision<fp32>} : vector<8x8xf32>, vector<8x16xf32>, vector<8x16xf32> -> vector<8x16xf32>
    %42 = vector.extract_strided_slice %21 {offsets = [0, 0], sizes = [16, 64], strides = [1, 1]} : vector<64x64xf32> to vector<16x64xf32>
    %cst_22 = arith.constant dense<0.000000e+00> : vector<8x64xf32>
    %43 = tpu.matmul %41, %42, %cst_22 {dimension_numbers = #tpu.dot_dimension_numbers<[1], [0], [0], [1], [0, 0, 1, 1], [], []>, precision = #tpu.contract_precision<fp32>} : vector<8x16xf32>, vector<16x64xf32>, vector<8x64xf32> -> vector<8x64xf32>
    %44 = arith.addf %26, %43 : vector<8x64xf32>
    %45 = vector.extract_strided_slice %22 {offsets = [0, 16], sizes = [8, 16], strides = [1, 1]} : vector<8x64xf32> to vector<8x16xf32>
    %46 = vector.extract_strided_slice %23 {offsets = [0, 16], sizes = [8, 16], strides = [1, 1]} : vector<8x64xf32> to vector<8x16xf32>
    %47 = vector.extract_strided_slice %24 {offsets = [0, 16], sizes = [8, 16], strides = [1, 1]} : vector<8x64xf32> to vector<8x16xf32>
    %cst_23 = arith.constant dense<0.000000e+00> : vector<8x8xf32>
    %48 = tpu.matmul %45, %46, %cst_23 {dimension_numbers = #tpu.dot_dimension_numbers<[1], [1], [0], [0], [0, 0, 1, 0], [], []>, precision = #tpu.contract_precision<fp32>} : vector<8x16xf32>, vector<8x16xf32>, vector<8x8xf32> -> vector<8x8xf32>
    %49 = arith.addf %48, %19 : vector<8x8xf32>
    %cst_24 = arith.constant dense<0xFF800000> : vector<8xf32>
    %50 = vector.multi_reduction <maximumf>, %49, %cst_24 [1] : vector<8x8xf32> to vector<8xf32>
    %51 = vector.shape_cast %50 : vector<8xf32> to vector<8x1xf32>
    %52 = vector.broadcast %51 : vector<8x1xf32> to vector<8x8xf32>
    %53 = arith.subf %49, %52 : vector<8x8xf32>
    %54 = math.exp %53 : vector<8x8xf32>
    %cst_25 = arith.constant dense<0.000000e+00> : vector<8xf32>
    %55 = vector.multi_reduction <add>, %54, %cst_25 [1] : vector<8x8xf32> to vector<8xf32>
    %56 = vector.shape_cast %55 : vector<8xf32> to vector<8x1xf32>
    %57 = vector.broadcast %56 : vector<8x1xf32> to vector<8x8xf32>
    %58 = arith.divf %54, %57 : vector<8x8xf32>
    %cst_26 = arith.constant dense<0.000000e+00> : vector<8x16xf32>
    %59 = tpu.matmul %58, %47, %cst_26 {dimension_numbers = #tpu.dot_dimension_numbers<[1], [0], [0], [1], [0, 0, 1, 1], [], []>, precision = #tpu.contract_precision<fp32>} : vector<8x8xf32>, vector<8x16xf32>, vector<8x16xf32> -> vector<8x16xf32>
    %60 = vector.extract_strided_slice %21 {offsets = [16, 0], sizes = [16, 64], strides = [1, 1]} : vector<64x64xf32> to vector<16x64xf32>
    %cst_27 = arith.constant dense<0.000000e+00> : vector<8x64xf32>
    %61 = tpu.matmul %59, %60, %cst_27 {dimension_numbers = #tpu.dot_dimension_numbers<[1], [0], [0], [1], [0, 0, 1, 1], [], []>, precision = #tpu.contract_precision<fp32>} : vector<8x16xf32>, vector<16x64xf32>, vector<8x64xf32> -> vector<8x64xf32>
    %62 = arith.addf %44, %61 : vector<8x64xf32>
    %63 = vector.extract_strided_slice %22 {offsets = [0, 32], sizes = [8, 16], strides = [1, 1]} : vector<8x64xf32> to vector<8x16xf32>
    %64 = vector.extract_strided_slice %23 {offsets = [0, 32], sizes = [8, 16], strides = [1, 1]} : vector<8x64xf32> to vector<8x16xf32>
    %65 = vector.extract_strided_slice %24 {offsets = [0, 32], sizes = [8, 16], strides = [1, 1]} : vector<8x64xf32> to vector<8x16xf32>
    %cst_28 = arith.constant dense<0.000000e+00> : vector<8x8xf32>
    %66 = tpu.matmul %63, %64, %cst_28 {dimension_numbers = #tpu.dot_dimension_numbers<[1], [1], [0], [0], [0, 0, 1, 0], [], []>, precision = #tpu.contract_precision<fp32>} : vector<8x16xf32>, vector<8x16xf32>, vector<8x8xf32> -> vector<8x8xf32>
    %67 = arith.addf %66, %19 : vector<8x8xf32>
    %cst_29 = arith.constant dense<0xFF800000> : vector<8xf32>
    %68 = vector.multi_reduction <maximumf>, %67, %cst_29 [1] : vector<8x8xf32> to vector<8xf32>
    %69 = vector.shape_cast %68 : vector<8xf32> to vector<8x1xf32>
    %70 = vector.broadcast %69 : vector<8x1xf32> to vector<8x8xf32>
    %71 = arith.subf %67, %70 : vector<8x8xf32>
    %72 = math.exp %71 : vector<8x8xf32>
    %cst_30 = arith.constant dense<0.000000e+00> : vector<8xf32>
    %73 = vector.multi_reduction <add>, %72, %cst_30 [1] : vector<8x8xf32> to vector<8xf32>
    %74 = vector.shape_cast %73 : vector<8xf32> to vector<8x1xf32>
    %75 = vector.broadcast %74 : vector<8x1xf32> to vector<8x8xf32>
    %76 = arith.divf %72, %75 : vector<8x8xf32>
    %cst_31 = arith.constant dense<0.000000e+00> : vector<8x16xf32>
    %77 = tpu.matmul %76, %65, %cst_31 {dimension_numbers = #tpu.dot_dimension_numbers<[1], [0], [0], [1], [0, 0, 1, 1], [], []>, precision = #tpu.contract_precision<fp32>} : vector<8x8xf32>, vector<8x16xf32>, vector<8x16xf32> -> vector<8x16xf32>
    %78 = vector.extract_strided_slice %21 {offsets = [32, 0], sizes = [16, 64], strides = [1, 1]} : vector<64x64xf32> to vector<16x64xf32>
    %cst_32 = arith.constant dense<0.000000e+00> : vector<8x64xf32>
    %79 = tpu.matmul %77, %78, %cst_32 {dimension_numbers = #tpu.dot_dimension_numbers<[1], [0], [0], [1], [0, 0, 1, 1], [], []>, precision = #tpu.contract_precision<fp32>} : vector<8x16xf32>, vector<16x64xf32>, vector<8x64xf32> -> vector<8x64xf32>
    %80 = arith.addf %62, %79 : vector<8x64xf32>
    %81 = vector.extract_strided_slice %22 {offsets = [0, 48], sizes = [8, 16], strides = [1, 1]} : vector<8x64xf32> to vector<8x16xf32>
    %82 = vector.extract_strided_slice %23 {offsets = [0, 48], sizes = [8, 16], strides = [1, 1]} : vector<8x64xf32> to vector<8x16xf32>
    %83 = vector.extract_strided_slice %24 {offsets = [0, 48], sizes = [8, 16], strides = [1, 1]} : vector<8x64xf32> to vector<8x16xf32>
    %cst_33 = arith.constant dense<0.000000e+00> : vector<8x8xf32>
    %84 = tpu.matmul %81, %82, %cst_33 {dimension_numbers = #tpu.dot_dimension_numbers<[1], [1], [0], [0], [0, 0, 1, 0], [], []>, precision = #tpu.contract_precision<fp32>} : vector<8x16xf32>, vector<8x16xf32>, vector<8x8xf32> -> vector<8x8xf32>
    %85 = arith.addf %84, %19 : vector<8x8xf32>
    %cst_34 = arith.constant dense<0xFF800000> : vector<8xf32>
    %86 = vector.multi_reduction <maximumf>, %85, %cst_34 [1] : vector<8x8xf32> to vector<8xf32>
    %87 = vector.shape_cast %86 : vector<8xf32> to vector<8x1xf32>
    %88 = vector.broadcast %87 : vector<8x1xf32> to vector<8x8xf32>
    %89 = arith.subf %85, %88 : vector<8x8xf32>
    %90 = math.exp %89 : vector<8x8xf32>
    %cst_35 = arith.constant dense<0.000000e+00> : vector<8xf32>
    %91 = vector.multi_reduction <add>, %90, %cst_35 [1] : vector<8x8xf32> to vector<8xf32>
    %92 = vector.shape_cast %91 : vector<8xf32> to vector<8x1xf32>
    %93 = vector.broadcast %92 : vector<8x1xf32> to vector<8x8xf32>
    %94 = arith.divf %90, %93 : vector<8x8xf32>
    %cst_36 = arith.constant dense<0.000000e+00> : vector<8x16xf32>
    %95 = tpu.matmul %94, %83, %cst_36 {dimension_numbers = #tpu.dot_dimension_numbers<[1], [0], [0], [1], [0, 0, 1, 1], [], []>, precision = #tpu.contract_precision<fp32>} : vector<8x8xf32>, vector<8x16xf32>, vector<8x16xf32> -> vector<8x16xf32>
    %96 = vector.extract_strided_slice %21 {offsets = [48, 0], sizes = [16, 64], strides = [1, 1]} : vector<64x64xf32> to vector<16x64xf32>
    %cst_37 = arith.constant dense<0.000000e+00> : vector<8x64xf32>
    %97 = tpu.matmul %95, %96, %cst_37 {dimension_numbers = #tpu.dot_dimension_numbers<[1], [0], [0], [1], [0, 0, 1, 1], [], []>, precision = #tpu.contract_precision<fp32>} : vector<8x16xf32>, vector<16x64xf32>, vector<8x64xf32> -> vector<8x64xf32>
    %98 = arith.addf %80, %97 : vector<8x64xf32>
    %c0_38 = arith.constant 0 : index
    %c0_39 = arith.constant 0 : index
    %99 = vector.load %arg9[%c0_38, %c0_39] : memref<16x64xf32, #tpu.memory_space<vmem>>, vector<8x64xf32>
    tpu.vector_store %arg9[%c0_38, %c0_39], %98 {strides = array<i32>} : memref<16x64xf32, #tpu.memory_space<vmem>>, vector<8x64xf32>,
    %100 = vector.extract_strided_slice %6 {offsets = [8, 0], sizes = [8, 64], strides = [1, 1]} : vector<16x64xf32> to vector<8x64xf32>
    %101 = vector.extract_strided_slice %12 {offsets = [8, 0], sizes = [8, 64], strides = [1, 1]} : vector<16x64xf32> to vector<8x64xf32>
    %102 = vector.extract_strided_slice %13 {offsets = [8, 0], sizes = [8, 64], strides = [1, 1]} : vector<16x64xf32> to vector<8x64xf32>
    %103 = vector.shape_cast %20 : vector<1x64xf32> to vector<1x64xf32>
    %104 = vector.broadcast %103 : vector<1x64xf32> to vector<8x64xf32>
    %105 = vector.extract_strided_slice %100 {offsets = [0, 0], sizes = [8, 16], strides = [1, 1]} : vector<8x64xf32> to vector<8x16xf32>
    %106 = vector.extract_strided_slice %101 {offsets = [0, 0], sizes = [8, 16], strides = [1, 1]} : vector<8x64xf32> to vector<8x16xf32>
    %107 = vector.extract_strided_slice %102 {offsets = [0, 0], sizes = [8, 16], strides = [1, 1]} : vector<8x64xf32> to vector<8x16xf32>
    %cst_40 = arith.constant dense<0.000000e+00> : vector<8x8xf32>
    %108 = tpu.matmul %105, %106, %cst_40 {dimension_numbers = #tpu.dot_dimension_numbers<[1], [1], [0], [0], [0, 0, 1, 0], [], []>, precision = #tpu.contract_precision<fp32>} : vector<8x16xf32>, vector<8x16xf32>, vector<8x8xf32> -> vector<8x8xf32>
    %109 = arith.addf %108, %19 : vector<8x8xf32>
    %cst_41 = arith.constant dense<0xFF800000> : vector<8xf32>
    %110 = vector.multi_reduction <maximumf>, %109, %cst_41 [1] : vector<8x8xf32> to vector<8xf32>
    %111 = vector.shape_cast %110 : vector<8xf32> to vector<8x1xf32>
    %112 = vector.broadcast %111 : vector<8x1xf32> to vector<8x8xf32>
    %113 = arith.subf %109, %112 : vector<8x8xf32>
    %114 = math.exp %113 : vector<8x8xf32>
    %cst_42 = arith.constant dense<0.000000e+00> : vector<8xf32>
    %115 = vector.multi_reduction <add>, %114, %cst_42 [1] : vector<8x8xf32> to vector<8xf32>
    %116 = vector.shape_cast %115 : vector<8xf32> to vector<8x1xf32>
    %117 = vector.broadcast %116 : vector<8x1xf32> to vector<8x8xf32>
    %118 = arith.divf %114, %117 : vector<8x8xf32>
    %cst_43 = arith.constant dense<0.000000e+00> : vector<8x16xf32>
    %119 = tpu.matmul %118, %107, %cst_43 {dimension_numbers = #tpu.dot_dimension_numbers<[1], [0], [0], [1], [0, 0, 1, 1], [], []>, precision = #tpu.contract_precision<fp32>} : vector<8x8xf32>, vector<8x16xf32>, vector<8x16xf32> -> vector<8x16xf32>
    %120 = vector.extract_strided_slice %21 {offsets = [0, 0], sizes = [16, 64], strides = [1, 1]} : vector<64x64xf32> to vector<16x64xf32>
    %cst_44 = arith.constant dense<0.000000e+00> : vector<8x64xf32>
    %121 = tpu.matmul %119, %120, %cst_44 {dimension_numbers = #tpu.dot_dimension_numbers<[1], [0], [0], [1], [0, 0, 1, 1], [], []>, precision = #tpu.contract_precision<fp32>} : vector<8x16xf32>, vector<16x64xf32>, vector<8x64xf32> -> vector<8x64xf32>
    %122 = arith.addf %104, %121 : vector<8x64xf32>
    %123 = vector.extract_strided_slice %100 {offsets = [0, 16], sizes = [8, 16], strides = [1, 1]} : vector<8x64xf32> to vector<8x16xf32>
    %124 = vector.extract_strided_slice %101 {offsets = [0, 16], sizes = [8, 16], strides = [1, 1]} : vector<8x64xf32> to vector<8x16xf32>
    %125 = vector.extract_strided_slice %102 {offsets = [0, 16], sizes = [8, 16], strides = [1, 1]} : vector<8x64xf32> to vector<8x16xf32>
    %cst_45 = arith.constant dense<0.000000e+00> : vector<8x8xf32>
    %126 = tpu.matmul %123, %124, %cst_45 {dimension_numbers = #tpu.dot_dimension_numbers<[1], [1], [0], [0], [0, 0, 1, 0], [], []>, precision = #tpu.contract_precision<fp32>} : vector<8x16xf32>, vector<8x16xf32>, vector<8x8xf32> -> vector<8x8xf32>
    %127 = arith.addf %126, %19 : vector<8x8xf32>
    %cst_46 = arith.constant dense<0xFF800000> : vector<8xf32>
    %128 = vector.multi_reduction <maximumf>, %127, %cst_46 [1] : vector<8x8xf32> to vector<8xf32>
    %129 = vector.shape_cast %128 : vector<8xf32> to vector<8x1xf32>
    %130 = vector.broadcast %129 : vector<8x1xf32> to vector<8x8xf32>
    %131 = arith.subf %127, %130 : vector<8x8xf32>
    %132 = math.exp %131 : vector<8x8xf32>
    %cst_47 = arith.constant dense<0.000000e+00> : vector<8xf32>
    %133 = vector.multi_reduction <add>, %132, %cst_47 [1] : vector<8x8xf32> to vector<8xf32>
    %134 = vector.shape_cast %133 : vector<8xf32> to vector<8x1xf32>
    %135 = vector.broadcast %134 : vector<8x1xf32> to vector<8x8xf32>
    %136 = arith.divf %132, %135 : vector<8x8xf32>
    %cst_48 = arith.constant dense<0.000000e+00> : vector<8x16xf32>
    %137 = tpu.matmul %136, %125, %cst_48 {dimension_numbers = #tpu.dot_dimension_numbers<[1], [0], [0], [1], [0, 0, 1, 1], [], []>, precision = #tpu.contract_precision<fp32>} : vector<8x8xf32>, vector<8x16xf32>, vector<8x16xf32> -> vector<8x16xf32>
    %138 = vector.extract_strided_slice %21 {offsets = [16, 0], sizes = [16, 64], strides = [1, 1]} : vector<64x64xf32> to vector<16x64xf32>
    %cst_49 = arith.constant dense<0.000000e+00> : vector<8x64xf32>
    %139 = tpu.matmul %137, %138, %cst_49 {dimension_numbers = #tpu.dot_dimension_numbers<[1], [0], [0], [1], [0, 0, 1, 1], [], []>, precision = #tpu.contract_precision<fp32>} : vector<8x16xf32>, vector<16x64xf32>, vector<8x64xf32> -> vector<8x64xf32>
    %140 = arith.addf %122, %139 : vector<8x64xf32>
    %141 = vector.extract_strided_slice %100 {offsets = [0, 32], sizes = [8, 16], strides = [1, 1]} : vector<8x64xf32> to vector<8x16xf32>
    %142 = vector.extract_strided_slice %101 {offsets = [0, 32], sizes = [8, 16], strides = [1, 1]} : vector<8x64xf32> to vector<8x16xf32>
    %143 = vector.extract_strided_slice %102 {offsets = [0, 32], sizes = [8, 16], strides = [1, 1]} : vector<8x64xf32> to vector<8x16xf32>
    %cst_50 = arith.constant dense<0.000000e+00> : vector<8x8xf32>
    %144 = tpu.matmul %141, %142, %cst_50 {dimension_numbers = #tpu.dot_dimension_numbers<[1], [1], [0], [0], [0, 0, 1, 0], [], []>, precision = #tpu.contract_precision<fp32>} : vector<8x16xf32>, vector<8x16xf32>, vector<8x8xf32> -> vector<8x8xf32>
    %145 = arith.addf %144, %19 : vector<8x8xf32>
    %cst_51 = arith.constant dense<0xFF800000> : vector<8xf32>
    %146 = vector.multi_reduction <maximumf>, %145, %cst_51 [1] : vector<8x8xf32> to vector<8xf32>
    %147 = vector.shape_cast %146 : vector<8xf32> to vector<8x1xf32>
    %148 = vector.broadcast %147 : vector<8x1xf32> to vector<8x8xf32>
    %149 = arith.subf %145, %148 : vector<8x8xf32>
    %150 = math.exp %149 : vector<8x8xf32>
    %cst_52 = arith.constant dense<0.000000e+00> : vector<8xf32>
    %151 = vector.multi_reduction <add>, %150, %cst_52 [1] : vector<8x8xf32> to vector<8xf32>
    %152 = vector.shape_cast %151 : vector<8xf32> to vector<8x1xf32>
    %153 = vector.broadcast %152 : vector<8x1xf32> to vector<8x8xf32>
    %154 = arith.divf %150, %153 : vector<8x8xf32>
    %cst_53 = arith.constant dense<0.000000e+00> : vector<8x16xf32>
    %155 = tpu.matmul %154, %143, %cst_53 {dimension_numbers = #tpu.dot_dimension_numbers<[1], [0], [0], [1], [0, 0, 1, 1], [], []>, precision = #tpu.contract_precision<fp32>} : vector<8x8xf32>, vector<8x16xf32>, vector<8x16xf32> -> vector<8x16xf32>
    %156 = vector.extract_strided_slice %21 {offsets = [32, 0], sizes = [16, 64], strides = [1, 1]} : vector<64x64xf32> to vector<16x64xf32>
    %cst_54 = arith.constant dense<0.000000e+00> : vector<8x64xf32>
    %157 = tpu.matmul %155, %156, %cst_54 {dimension_numbers = #tpu.dot_dimension_numbers<[1], [0], [0], [1], [0, 0, 1, 1], [], []>, precision = #tpu.contract_precision<fp32>} : vector<8x16xf32>, vector<16x64xf32>, vector<8x64xf32> -> vector<8x64xf32>
    %158 = arith.addf %140, %157 : vector<8x64xf32>
    %159 = vector.extract_strided_slice %100 {offsets = [0, 48], sizes = [8, 16], strides = [1, 1]} : vector<8x64xf32> to vector<8x16xf32>
    %160 = vector.extract_strided_slice %101 {offsets = [0, 48], sizes = [8, 16], strides = [1, 1]} : vector<8x64xf32> to vector<8x16xf32>
    %161 = vector.extract_strided_slice %102 {offsets = [0, 48], sizes = [8, 16], strides = [1, 1]} : vector<8x64xf32> to vector<8x16xf32>
    %cst_55 = arith.constant dense<0.000000e+00> : vector<8x8xf32>
    %162 = tpu.matmul %159, %160, %cst_55 {dimension_numbers = #tpu.dot_dimension_numbers<[1], [1], [0], [0], [0, 0, 1, 0], [], []>, precision = #tpu.contract_precision<fp32>} : vector<8x16xf32>, vector<8x16xf32>, vector<8x8xf32> -> vector<8x8xf32>
    %163 = arith.addf %162, %19 : vector<8x8xf32>
    %cst_56 = arith.constant dense<0xFF800000> : vector<8xf32>
    %164 = vector.multi_reduction <maximumf>, %163, %cst_56 [1] : vector<8x8xf32> to vector<8xf32>
    %165 = vector.shape_cast %164 : vector<8xf32> to vector<8x1xf32>
    %166 = vector.broadcast %165 : vector<8x1xf32> to vector<8x8xf32>
    %167 = arith.subf %163, %166 : vector<8x8xf32>
    %168 = math.exp %167 : vector<8x8xf32>
    %cst_57 = arith.constant dense<0.000000e+00> : vector<8xf32>
    %169 = vector.multi_reduction <add>, %168, %cst_57 [1] : vector<8x8xf32> to vector<8xf32>
    %170 = vector.shape_cast %169 : vector<8xf32> to vector<8x1xf32>
    %171 = vector.broadcast %170 : vector<8x1xf32> to vector<8x8xf32>
    %172 = arith.divf %168, %171 : vector<8x8xf32>
    %cst_58 = arith.constant dense<0.000000e+00> : vector<8x16xf32>
    %173 = tpu.matmul %172, %161, %cst_58 {dimension_numbers = #tpu.dot_dimension_numbers<[1], [0], [0], [1], [0, 0, 1, 1], [], []>, precision = #tpu.contract_precision<fp32>} : vector<8x8xf32>, vector<8x16xf32>, vector<8x16xf32> -> vector<8x16xf32>
    %174 = vector.extract_strided_slice %21 {offsets = [48, 0], sizes = [16, 64], strides = [1, 1]} : vector<64x64xf32> to vector<16x64xf32>
    %cst_59 = arith.constant dense<0.000000e+00> : vector<8x64xf32>
    %175 = tpu.matmul %173, %174, %cst_59 {dimension_numbers = #tpu.dot_dimension_numbers<[1], [0], [0], [1], [0, 0, 1, 1], [], []>, precision = #tpu.contract_precision<fp32>} : vector<8x16xf32>, vector<16x64xf32>, vector<8x64xf32> -> vector<8x64xf32>
    %176 = arith.addf %158, %175 : vector<8x64xf32>
    %c8 = arith.constant 8 : index
    %c0_60 = arith.constant 0 : index
    %177 = vector.load %arg9[%c8, %c0_60] : memref<16x64xf32, #tpu.memory_space<vmem>>, vector<8x64xf32>
    tpu.vector_store %arg9[%c8, %c0_60], %176 {strides = array<i32>} : memref<16x64xf32, #tpu.memory_space<vmem>>, vector<8x64xf32>,
    return
  }
  func.func @transform_0(%arg0: i32) -> (i32, i32) {
    %c0_i32 = arith.constant 0 : i32
    %c0_i32_0 = arith.constant 0 : i32
    %c0_i32_1 = arith.constant 0 : i32
    return %c0_i32, %c0_i32_0 : i32, i32
  }
  func.func @transform_1(%arg0: i32) -> (i32, i32) {
    %c0_i32 = arith.constant 0 : i32
    %c0_i32_0 = arith.constant 0 : i32
    %c0_i32_1 = arith.constant 0 : i32
    return %c0_i32, %c0_i32_0 : i32, i32
  }
  func.func @transform_2(%arg0: i32) -> (i32, i32) {
    %c0_i32 = arith.constant 0 : i32
    %c0_i32_0 = arith.constant 0 : i32
    %c0_i32_1 = arith.constant 0 : i32
    return %c0_i32, %c0_i32_0 : i32, i32
  }
  func.func @transform_3(%arg0: i32) -> (i32, i32) {
    %c0_i32 = arith.constant 0 : i32
    %c0_i32_0 = arith.constant 0 : i32
    %c0_i32_1 = arith.constant 0 : i32
    return %c0_i32, %c0_i32_0 : i32, i32
  }
  func.func @transform_4(%arg0: i32) -> (i32, i32) {
    %c0_i32 = arith.constant 0 : i32
    %c0_i32_0 = arith.constant 0 : i32
    %c0_i32_1 = arith.constant 0 : i32
    return %c0_i32, %c0_i32_0 : i32, i32
  }
  func.func @transform_5(%arg0: i32) -> (i32, i32) {
    %c0_i32 = arith.constant 0 : i32
    %c0_i32_0 = arith.constant 0 : i32
    %c0_i32_1 = arith.constant 0 : i32
    return %c0_i32, %c0_i32_0 : i32, i32
  }
  func.func @transform_6(%arg0: i32) -> (i32, i32) {
    %c0_i32 = arith.constant 0 : i32
    %c0_i32_0 = arith.constant 0 : i32
    %c0_i32_1 = arith.constant 0 : i32
    return %c0_i32, %c0_i32_0 : i32, i32
  }
  func.func @transform_7(%arg0: i32) -> (i32, i32) {
    %c0_i32 = arith.constant 0 : i32
    %c0_i32_0 = arith.constant 0 : i32
    %c0_i32_1 = arith.constant 0 : i32
    return %c0_i32, %c0_i32_0 : i32, i32
  }
  func.func @transform_8(%arg0: i32) -> (i32, i32) {
    %c0_i32 = arith.constant 0 : i32
    %c0_i32_0 = arith.constant 0 : i32
    %c0_i32_1 = arith.constant 0 : i32
    return %c0_i32, %c0_i32_0 : i32, i32
  }
}

</mosaic_0001>

<bundles_post_ra>
// kernel: tpu_custom_call.1
= control target key start
LH: loop header
LB: loop body
LE: loop exit
PB: predicated region body
PF: predicated region fallthrough
CT: control target
= control target key end

     0   :  { %13 = vsyncpa [#allocation3], 0  ;;  %s15877_s0 = inlined_call_operand.hbm [shape: f32[16,64], index: 0, kind: input, shape index: {}]   ;;  %s15878_s1 = inlined_call_operand.hbm [shape: f32[16,64], index: 1, kind: input, shape index: {}]   ;;  %s15879_s2 = inlined_call_operand.hbm [shape: f32[64,64], index: 2, kind: input, shape index: {}]   ;;  %s15880_s3 = inlined_call_operand.vmem [shape: f32[1,64], index: 3, kind: input, shape index: {}]   ;;  %s15881_s4 = inlined_call_operand.hbm [shape: f32[64,128], index: 4, kind: input, shape index: {}]   ;;  %s15882_s5 = inlined_call_operand.vmem [shape: f32[1,128], index: 5, kind: input, shape index: {}]   ;;  %s15883_s6 = inlined_call_operand.hbm [shape: f32[64,64], index: 6, kind: input, shape index: {}]   ;;  %s15884_s7 = inlined_call_operand.vmem [shape: f32[1,64], index: 7, kind: input, shape index: {}]   ;;  %s15885_s8 = inlined_call_operand.hbm [shape: f32[16,64], index: 8, kind: output, shape index: {}]  }
   0x1   :  { %14 = vsyncpa [#allocation6], 0 }
   0x2   :  { %15 = vsyncpa [#allocation9], 0 }
   0x3   :  { %16 = vsyncpa [#allocation4], 0  ;;  %s14699_s27 = smov [#allocation5]   ;;  %s14700_s29 = smov [#allocation8]  }
   0x4   :  { %s34_s28 = sshll.u32 %s14699_s27, 4  ;;  %s60_s30 = sshll.u32 %s14700_s29, 4  ;;  %s35_s28 = int_to_ptr.vmem [resolvable:$true] %s34_s28  ;;  %s14762_s30 = int_to_ptr.vmem [resolvable:$true] %s60_s30 }
   0x5   :  { %s14559_s11 = scalar_lea.hbm %s15878_s1, 256 }
   0x6   :  { %p14560_p0 = scmp.ne.s32.totalorder %s15878_s1, %s14559_s11  ;;  %p14563_p1 = scmp.lt.u32.totalorder %s14559_s11, %s15878_s1 }
   0x8   :  { %p14565_p2 = pnand %p14563_p1, %p14560_p0 }
   0xa   :  { %14568 = shalt.err (!%p14565_p2)
}
   0xb   :  { %s14569_s16 = scalar_lea.vmem %s35_s28, 256  ;;  %p14574_p4 = scmp.lt.s32.totalorder %s35_s28, %s35_s28 }
   0xc   :  { %p14570_p3 = scmp.ne.s32.totalorder %s35_s28, %s14569_s16  ;;  %p14575_p5 = scmp.lt.s32.totalorder %s14569_s16, %s14569_s16 }
   0xe   :  { %p14576_p6 = por %p14575_p5, %p14574_p4 }
  0x10   :  { %p14577_p7 = pnand %p14576_p6, %p14570_p3 }
  0x12   :  { %14580 = shalt.err (!%p14577_p7)
}
  0x13   :  { %s14701_s17 = smov 128   ;;  %s14702_s18 = smov 8  }
  0x14   :  { %40 = dma.hbm_to_vmem [thread:$0]  %s15878_s1, 256, %s35_s28, [#allocation6], %s14701_s17, %s14701_s17, %s14702_s18  }
  0x15   :  { %s14581_s23 = scalar_lea.hbm %s15881_s4, 1024 }
  0x16   :  { %p14582_p8 = scmp.ne.s32.totalorder %s15881_s4, %s14581_s23  ;;  %p14585_p9 = scmp.lt.u32.totalorder %s14581_s23, %s15881_s4 }
  0x18   :  { %p14587_p10 = pnand %p14585_p9, %p14582_p8 }
  0x1a   :  { %14590 = shalt.err (!%p14587_p10)
}
  0x1b   :  { %s14591_s29 = scalar_lea.vmem %s14762_s30, 1024  ;;  %p14596_p12 = scmp.lt.s32.totalorder %s14762_s30, %s14762_s30 }
  0x1c   :  { %p14592_p11 = scmp.ne.s32.totalorder %s14762_s30, %s14591_s29  ;;  %p14597_p13 = scmp.lt.s32.totalorder %s14591_s29, %s14591_s29 }
  0x1e   :  { %p14598_p0 = por %p14597_p13, %p14596_p12 }
  0x20   :  { %p14599_p1 = pnand %p14598_p0, %p14592_p11 }
  0x22   :  { %14602 = shalt.err (!%p14599_p1)
}
  0x23   :  { %66 = dma.hbm_to_vmem [thread:$0]  %s15881_s4, 1024, %s14762_s30, [#allocation9], %s14701_s17, %s14701_s17, %s14702_s18  }
  0x24   :  { %s14703_s9 = smov [#allocation2]   ;;  %s14704_s11 = smov [#allocation7]  }
  0x25   :  { %s22_s10 = sshll.u32 %s14703_s9, 4  ;;  %s46_s12 = sshll.u32 %s14704_s11, 4  ;;  %s23_s10 = int_to_ptr.vmem [resolvable:$true] %s22_s10  ;;  %s14799_s12 = int_to_ptr.vmem [resolvable:$true] %s46_s12 }
  0x26   :  { %s14603_s15 = scalar_lea.hbm %s15877_s0, 256 }
  0x27   :  { %p14604_p2 = scmp.ne.s32.totalorder %s15877_s0, %s14603_s15  ;;  %p14607_p3 = scmp.lt.u32.totalorder %s14603_s15, %s15877_s0 }
  0x29   :  { %p14609_p4 = pnand %p14607_p3, %p14604_p2 }
  0x2b   :  { %14612 = shalt.err (!%p14609_p4)
}
  0x2c   :  { %s14613_s4 = scalar_lea.vmem %s23_s10, 256  ;;  %p14618_p6 = scmp.lt.s32.totalorder %s23_s10, %s23_s10 }
  0x2d   :  { %p14614_p5 = scmp.ne.s32.totalorder %s23_s10, %s14613_s4  ;;  %p14619_p7 = scmp.lt.s32.totalorder %s14613_s4, %s14613_s4 }
  0x2f   :  { %p14620_p8 = por %p14619_p7, %p14618_p6 }
  0x31   :  { %p14621_p9 = pnand %p14620_p8, %p14614_p5 }
  0x33   :  { %14624 = shalt.err (!%p14621_p9)
}
  0x34   :  { %28 = dma.hbm_to_vmem [thread:$0]  %s15877_s0, 256, %s23_s10, [#allocation3], %s14701_s17, %s14701_s17, %s14702_s18  }
  0x35   :  { %s14625_s25 = scalar_lea.hbm %s15879_s2, 1024 }
  0x36   :  { %p14626_p10 = scmp.ne.s32.totalorder %s15879_s2, %s14625_s25  ;;  %p14629_p11 = scmp.lt.u32.totalorder %s14625_s25, %s15879_s2 }
  0x38   :  { %p14631_p12 = pnand %p14629_p11, %p14626_p10 }
  0x3a   :  { %14634 = shalt.err (!%p14631_p12)
}
  0x3b   :  { %s14635_s28 = scalar_lea.vmem %s14799_s12, 1024  ;;  %p14640_p0 = scmp.lt.s32.totalorder %s14799_s12, %s14799_s12 }
  0x3c   :  { %p14636_p13 = scmp.ne.s32.totalorder %s14799_s12, %s14635_s28  ;;  %p14641_p1 = scmp.lt.s32.totalorder %s14635_s28, %s14635_s28 }
  0x3e   :  { %p14642_p2 = por %p14641_p1, %p14640_p0 }
  0x40   :  { %p14643_p3 = pnand %p14642_p2, %p14636_p13 }
  0x42   :  { %14646 = shalt.err (!%p14643_p3)
}
  0x43   :  { %52 = dma.hbm_to_vmem [thread:$0]  %s15879_s2, 1024, %s14799_s12, [#allocation6], %s14701_s17, %s14701_s17, %s14702_s18  }
  0x44   :  { %s14705_s10 = smov [#allocation10]   ;;  %s14647_s15 = scalar_lea.hbm %s15883_s6, 1024 }
  0x45   :  { %s74_s11 = sshll.u32 %s14705_s10, 4  ;;  %p14648_p4 = scmp.ne.s32.totalorder %s15883_s6, %s14647_s15  ;;  %s75_s11 = int_to_ptr.vmem [resolvable:$true] %s74_s11 }
  0x46   :  { %p14651_p5 = scmp.lt.u32.totalorder %s14647_s15, %s15883_s6 }
  0x48   :  { %p14653_p6 = pnand %p14651_p5, %p14648_p4 }
  0x4a   :  { %14656 = shalt.err (!%p14653_p6)
}
  0x4b   :  { %s14657_s4 = scalar_lea.vmem %s75_s11, 1024  ;;  %p14662_p8 = scmp.lt.s32.totalorder %s75_s11, %s75_s11 }
  0x4c   :  { %p14658_p7 = scmp.ne.s32.totalorder %s75_s11, %s14657_s4  ;;  %p14663_p9 = scmp.lt.s32.totalorder %s14657_s4, %s14657_s4 }
  0x4e   :  { %p14664_p10 = por %p14663_p9, %p14662_p8 }
  0x50   :  { %p14665_p11 = pnand %p14664_p10, %p14658_p7 }
  0x52   :  { %14668 = shalt.err (!%p14665_p11)
}
  0x53   :  { %80 = dma.hbm_to_vmem [thread:$0]  %s15883_s6, 1024, %s75_s11, [#allocation9], %s14701_s17, %s14701_s17, %s14702_s18  }
  0x54   :  { %14691 = dma.done.wait [#allocation3], 256  }
  0x55   :  { %14692 = vsyncadd [#allocation3], 4294967040 }
  0x56   :  { %14693 = dma.done.wait [#allocation6], 1280  }
  0x57   :  { %14694 = vsyncadd [#allocation6], 4294966016 }
  0x58   :  { %14695 = dma.done.wait [#allocation9], 2048  }
  0x59   :  { %14696 = vsyncadd [#allocation9], 4294965248  ;;  %v102_v0 = vld [vmem:[#allocation7] sm:$0xff]  ;;  %v103_v1 = vld [vmem:[#allocation7 + $0x8] sm:$0xff]  ;;  %vm117_vm0 = vcmask 523264   ;;  %vm14707_vm1 = vmmov 0  }
  0x5a   :  { %v104_v2 = vld [vmem:[#allocation7 + $0x10] sm:$0xff]  ;;  %v125_v3 = vand.u32 4294901760, %v102_v0  ;;  %v128_v4 = vand.u32 4294901760, %v103_v1  ;;  %v105_v5 = vld [vmem:[#allocation7 + $0x18] sm:$0xff]  ;;  %v106_v7 = vld [vmem:[#allocation7 + $0x20] sm:$0xff]  ;;  %vm1326_vm2 = vcmask 130048  }
  0x5b   :  { %v131_v6 = vand.u32 4294901760, %v104_v2  ;;  %v107_v8 = vld [vmem:[#allocation7 + $0x28] sm:$0xff]  ;;  %v134_v9 = vand.u32 4294901760, %v105_v5  ;;  %v137_v10 = vand.u32 4294901760, %v106_v7  ;;  %v108_v12 = vld [vmem:[#allocation7 + $0x30] sm:$0xff]  ;;  %v109_v13 = vld [vmem:[#allocation7 + $0x38] sm:$0xff] }
  0x5c   :  { %v140_v11 = vand.u32 4294901760, %v107_v8  ;;  %v98_v14 = vld [vmem:[#allocation2] sm:$0xff]  ;;  %v14851_v15 = vpack.c.bf16 %v128_v4, %v125_v3  ;;  %v14853_v16 = vsub.f32 %v102_v0, %v125_v3  ;;  %v14855_v17 = vsub.f32 %v103_v1, %v128_v4  ;;  %v99_v19 = vld [vmem:[#allocation2 + $0x8] sm:$0xff]  ;;  %v706_v58 = vld [vmem:[#allocation8 + $0x10] sm:$0xff]  ;;  %s14709_s24 = smov 112   ;;  %s14712_s25 = smov 32  }
  0x5d   :  { %v143_v18 = vand.u32 4294901760, %v108_v12  ;;  %v14857_v20 = vpack.c.bf16 %v134_v9, %v131_v6  ;;  %v146_v22 = vand.u32 4294901760, %v109_v13  ;;  %v14861_v23 = vsub.f32 %v104_v2, %v131_v6  ;;  %v14896_v40 = vld [vmem:[#allocation8] sm:$0xff]  ;;  %v705_v45 = vld [vmem:[#allocation8 + $0x8] sm:$0xff]  ;;  %v707_v63 = vld [vmem:[#allocation8 + $0x18] sm:$0xff]  ;;  %s14713_s26 = smov 80  }
  0x5e   :  { %v14859_v21 = vpack.c.bf16 %v140_v11, %v137_v10  ;;  %13889 = vmatprep.subr.bf16.mxu1 %v14851_v15  ;;  %v220_v24 = vand.u32 4294901760, %v14853_v16  ;;  %v227_v25 = vand.u32 4294901760, %v14855_v17  ;;  %v14866_v26 = vsub.f32 %v105_v5, %v134_v9  ;;  %v708_v3 = vld [vmem:[#allocation8 + $0x20] sm:$0xff]  ;;  %v709_v4 = vld [vmem:[#allocation8 + $0x28] sm:$0xff]  ;;  %s14714_s27 = smov 48   ;;  %s14715_s29 = smov 16  }
  0x5f   :  { %v119_v27 = vsel %vm117_vm0, %v98_v14, 0  ;;  %13891 = vmatpush3.bf16.msra.mxu1 %v14851_v15  ;;  %v14870_v28 = vpack.c.bf16 %v146_v22, %v143_v18  ;;  %v234_v29 = vand.u32 4294901760, %v14861_v23  ;;  %v122_v31 = vsel %vm117_vm0, %v99_v19, 0 }
  0x60   :  { %v14873_v30 = vand.u32 4294901760, %v119_v27  ;;  %13893 = vmatprep.subr.bf16.mxu1 %v14857_v20  ;;  %v221_v32 = vsub.f32 %v14853_v16, %v220_v24  ;;  %v228_v33 = vsub.f32 %v14855_v17, %v227_v25  ;;  %v241_v34 = vand.u32 4294901760, %v14866_v26 }
  0x61   :  { %v14884_v35 = vand.u32 4294901760, %v122_v31  ;;  %v235_v36 = vsub.f32 %v14861_v23, %v234_v29  ;;  %v14892_v38 = vsub.f32 %v106_v7, %v137_v10  ;;  %v14894_v39 = vsub.f32 %v107_v8, %v140_v11 }
  0x62   :  { %v14890_v37 = vsub.f32 %v119_v27, %v14873_v30  ;;  %12879 = vmatprep.mubr.f32.mxu0 %v14873_v30  ;;  %v222_v41 = vand.u32 4294901760, %v221_v32  ;;  %v229_v42 = vand.u32 4294901760, %v228_v33  ;;  %v242_v43 = vsub.f32 %v14866_v26, %v241_v34  ;;  %v711_v27 = vld [vmem:[#allocation8 + $0x38] sm:$0xff] }
  0x63   :  { %v14903_v44 = vsub.f32 %v122_v31, %v14884_v35  ;;  %13895 = vmatpush3.bf16.msra.mxu1 %v14857_v20  ;;  %v236_v46 = vand.u32 4294901760, %v235_v36  ;;  %v248_v48 = vand.u32 4294901760, %v14892_v38  ;;  %v255_v49 = vand.u32 4294901760, %v14894_v39  ;;  %v101_v33 = vld [vmem:[#allocation5 + $0x8] sm:$0xff] }
  0x64   :  { %v199_v47 = vand.u32 4294901760, %v14890_v37  ;;  %13897 = vmatprep.subr.bf16.mxu1 %v14859_v21  ;;  %v13904_v50 = vpack.c.bf16 %v229_v42, %v222_v41  ;;  %v243_v51 = vand.u32 4294901760, %v242_v43  ;;  %v726_v53 = vand.u32 4294901760, %v14896_v40 }
  0x65   :  { %v209_v52 = vand.u32 4294901760, %v14903_v44  ;;  %v249_v55 = vsub.f32 %v14892_v38, %v248_v48  ;;  %v256_v56 = vsub.f32 %v14894_v39, %v255_v49  ;;  %v729_v57 = vand.u32 4294901760, %v705_v45 }
  0x66   :  { %v200_v54 = vsub.f32 %v14890_v37, %v199_v47  ;;  %13905 = vmatprep.subr.bf16.mxu0 %v13904_v50  ;;  %v13908_v59 = vpack.c.bf16 %v243_v51, %v236_v46  ;;  %v14924_v61 = vsub.f32 %v108_v12, %v143_v18  ;;  %v14926_v62 = vsub.f32 %v109_v13, %v146_v22  ;;  %v710_v12 = vld [vmem:[#allocation8 + $0x30] sm:$0xff] }
  0x67   :  { %v210_v60 = vsub.f32 %v14903_v44, %v209_v52  ;;  %13899 = vmatpush3.bf16.msra.mxu1 %v14859_v21  ;;  %13907 = vmatpush3.bf16.msra.mxu0 %v13904_v50  ;;  %v250_v1 = vand.u32 4294901760, %v249_v55  ;;  %v257_v2 = vand.u32 4294901760, %v256_v56  ;;  %v14930_v5 = vpack.c.bf16 %v729_v57, %v726_v53  ;;  %v100_v13 = vld [vmem:[#allocation5] sm:$0xff] }
  0x68   :  { %v201_v0 = vand.u32 4294901760, %v200_v54  ;;  %13901 = vmatprep.subr.bf16.mxu1 %v14870_v28  ;;  %13909 = vmatprep.subr.bf16.mxu0 %v13908_v59  ;;  %v262_v6 = vand.u32 4294901760, %v14924_v61  ;;  %v269_v7 = vand.u32 4294901760, %v14926_v62  ;;  %v732_v8 = vand.u32 4294901760, %v706_v58 }
  0x69   :  { %v211_v9 = vand.u32 4294901760, %v210_v60  ;;  %v13912_v10 = vpack.c.bf16 %v257_v2, %v250_v1  ;;  %v735_v11 = vand.u32 4294901760, %v707_v63  ;;  %v738_v19 = vand.u32 4294901760, %v708_v3 }
  0x6a   :  { %12860 = vmatprep.mubr.f32.mxu1 %v201_v0  ;;  %v263_v14 = vsub.f32 %v14924_v61, %v262_v6  ;;  %v270_v18 = vsub.f32 %v14926_v62, %v269_v7  ;;  %v741_v22 = vand.u32 4294901760, %v709_v4  ;;  %v13920_v32 = vpack.c.bf16 %v14855_v17, %v14853_v16 }
  0x6b   :  { %13903 = vmatpush3.bf16.msra.mxu1 %v14870_v28  ;;  %13911 = vmatpush3.bf16.msra.mxu0 %v13908_v59  ;;  %v14941_v31 = vpack.c.bf16 %v735_v11, %v732_v8  ;;  %v744_v42 = vand.u32 4294901760, %v710_v12  ;;  %v720_v43 = vsel %vm117_vm0, %v100_v13, 0  ;;  %v747_v46 = vand.u32 4294901760, %v711_v27 }
  0x6c   :  { %13913 = vmatprep.subr.bf16.mxu0 %v13912_v10  ;;  %13985 = vmatprep.subr.bf16.mxu1 %v14930_v5  ;;  %v264_v36 = vand.u32 4294901760, %v263_v14  ;;  %v271_v41 = vand.u32 4294901760, %v270_v18  ;;  %v14947_v50 = vand.u32 4294901760, %v720_v43  ;;  %v14950_v51 = vsub.f32 %v14896_v40, %v726_v53 }
  0x6d   :  { %v14952_v54 = vsub.f32 %v705_v45, %v729_v57  ;;  %v14954_v56 = vpack.c.bf16 %v741_v22, %v738_v19  ;;  %v723_v59 = vsel %vm117_vm0, %v101_v33, 0  ;;  %v14957_v60 = vsub.f32 %v706_v58, %v732_v8 }
  0x6e   :  { %12861 = vmatmul.mubr.f32.vlgmr.msra.gmra.mrb[0].mxu1 %v211_v9  ;;  %v13916_v55 = vpack.c.bf16 %v271_v41, %v264_v36  ;;  %v14961_v0 = vsub.f32 %v720_v43, %v14947_v50  ;;  %v821_v1 = vand.u32 4294901760, %v14950_v51  ;;  %v14965_v45 = vand.u32 4294901760, %v723_v59 }
  0x6f   :  { %13915 = vmatpush3.bf16.msra.mxu0 %v13912_v10  ;;  %13987 = vmatpush3.bf16.msra.mxu1 %v14930_v5  ;;  %v828_v40 = vand.u32 4294901760, %v14952_v54  ;;  %v15886_v53 = vand.u32 4294901760, %v14957_v60  ;;  %v14969_v57 = vsub.f32 %v707_v63, %v735_v11  ;;  %v14971_v58 = vsub.f32 %v708_v3, %v738_v19 }
  0x70   :  { %13917 = vmatprep.subr.bf16.mxu0 %v13916_v55  ;;  %13989 = vmatprep.subr.bf16.mxu1 %v14941_v31  ;;  %v14973_v2 = vsub.f32 %v709_v4, %v741_v22  ;;  %v800_v8 = vand.u32 4294901760, %v14961_v0  ;;  %v822_v9 = vsub.f32 %v14950_v51, %v821_v1  ;;  %v14983_v13 = vsub.f32 %v723_v59, %v14965_v45 }
  0x71   :  { %v829_v10 = vsub.f32 %v14952_v54, %v828_v40  ;;  %v13924_v63 = vpack.c.bf16 %v14866_v26, %v14861_v23  ;;  %v836_v3 = vsub.f32 %v14957_v60, %v15886_v53  ;;  %v842_v4 = vand.u32 4294901760, %v14969_v57 }
  0x72   :  { %v801_v11 = vsub.f32 %v14961_v0, %v800_v8  ;;  %v15889_v14 = vand.u32 4294901760, %v14983_v13  ;;  %v15887_v18 = vand.u32 4294901760, %v14971_v58  ;;  %v15888_v19 = vand.u32 4294901760, %v14973_v2 }
  0x73   :  { %13919 = vmatpush3.bf16.msra.mxu0 %v13916_v55  ;;  %13991 = vmatpush3.bf16.msra.mxu1 %v14941_v31  ;;  %v14999_v22 = vpack.c.bf16 %v747_v46, %v744_v42  ;;  %v823_v33 = vand.u32 4294901760, %v822_v9  ;;  %v830_v36 = vand.u32 4294901760, %v829_v10  ;;  %v843_v41 = vsub.f32 %v14969_v57, %v842_v4 }
  0x74   :  { %13921 = vmatprep.subr.bf16.mxu0 %v13920_v32  ;;  %13993 = vmatprep.subr.bf16.mxu1 %v14954_v56  ;;  %v802_v43 = vand.u32 4294901760, %v801_v11  ;;  %v15004_v55 = vsub.f32 %v710_v12, %v744_v42  ;;  %v811_v59 = vsub.f32 %v14983_v13, %v15889_v14  ;;  %v15010_v53 = vsub.f32 %v711_v27, %v747_v46 }
  0x75   :  { %v13928_v9 = vpack.c.bf16 %v14894_v39, %v14892_v38  ;;  %v837_v10 = vand.u32 4294901760, %v836_v3  ;;  %v850_v12 = vsub.f32 %v14971_v58, %v15887_v18  ;;  %v857_v42 = vsub.f32 %v14973_v2, %v15888_v19 }
  0x76   :  { %12880 = vmatmul.mubr.f32.vlgmr.msra.gmra.mrb[0].mxu0 %v14884_v35  ;;  %v14000_v27 = vpack.c.bf16 %v830_v36, %v823_v33  ;;  %v844_v46 = vand.u32 4294901760, %v843_v41  ;;  %v870_v11 = vand.u32 4294901760, %v15010_v53  ;;  %12974 = vmatprep.mubr.f32.mxu1 %v802_v43  ;;  %v812_v3 = vand.u32 4294901760, %v811_v59 }
  0x77   :  { %13923 = vmatpush3.bf16.msra.mxu0 %v13920_v32  ;;  %13995 = vmatpush3.bf16.msra.mxu1 %v14954_v56  ;;  %v863_v32 = vand.u32 4294901760, %v15004_v55  ;;  %v13932_v18 = vpack.c.bf16 %v14926_v62, %v14924_v61  ;;  %v851_v19 = vand.u32 4294901760, %v850_v12  ;;  %v858_v33 = vand.u32 4294901760, %v857_v42 }
  0x78   :  { %13925 = vmatprep.subr.bf16.mxu0 %v13924_v63  ;;  %13997 = vmatprep.subr.bf16.mxu1 %v14999_v22  ;;  %v14004_v14 = vpack.c.bf16 %v844_v46, %v837_v10  ;;  %v871_v41 = vsub.f32 %v15010_v53, %v870_v11  ;;  %v14028_v16 = vpack.c.bf16 %v15010_v53, %v15004_v55  ;;  %v15891_v26 = vand.u32 4294901760, %v14983_v13 }
  0x79   :  { %12898 = vmatprep.mubr.f32.mxu0 %v14890_v37  ;;  %v864_v36 = vsub.f32 %v15004_v55, %v863_v32  ;;  %v13952_v37 = vpack.c.bf16 %v227_v25, %v220_v24  ;;  %v13960_v17 = vpack.c.bf16 %v255_v49, %v248_v48  ;;  %v13964_v23 = vpack.c.bf16 %v269_v7, %v262_v6  ;;  %v12386_v7 = vld [vmem:[%s15882_s5] ss:$0 sm:$0xff]  ;;  %s14710_s5 = smov 96  }
  0x7a   :  { %v872_v59 = vand.u32 4294901760, %v871_v41  ;;  %v14048_v24 = vpack.c.bf16 %v828_v40, %v821_v1  ;;  %vm1779_vm4 = vcmask 64512  }
  0x7b   :  { %13927 = vmatpush3.bf16.msra.mxu0 %v13924_v63  ;;  %13999 = vmatpush3.bf16.msra.mxu1 %v14999_v22  ;;  %v14008_v63 = vpack.c.bf16 %v858_v33, %v851_v19  ;;  %v865_v43 = vand.u32 4294901760, %v864_v36  ;;  %v14016_v19 = vpack.c.bf16 %v14952_v54, %v14950_v51 }
  0x7c   :  { %13929 = vmatprep.subr.bf16.mxu0 %v13928_v9  ;;  %14001 = vmatprep.subr.bf16.mxu1 %v14000_v27 }
  0x7d   :  { %v14012_v10 = vpack.c.bf16 %v872_v59, %v865_v43 }
  0x7e   :  { %12975 = vmatmul.mubr.f32.vlgmr.msra.gmra.mrb[2].mxu1 %v812_v3 }
  0x7f   :  { %13931 = vmatpush3.bf16.msra.mxu0 %v13928_v9  ;;  %14003 = vmatpush3.bf16.msra.mxu1 %v14000_v27 }
  0x80   :  { %13933 = vmatprep.subr.bf16.mxu0 %v13932_v18  ;;  %14005 = vmatprep.subr.bf16.mxu1 %v14004_v14 }
  0x81   :  { %12993 = vmatprep.mubr.f32.mxu1 %v14947_v50 }
  0x83   :  { %13935 = vmatpush3.bf16.msra.mxu0 %v13932_v18  ;;  %14007 = vmatpush3.bf16.msra.mxu1 %v14004_v14  ;;  %v14020_v14 = vpack.c.bf16 %v14969_v57, %v14957_v60  ;;  %v13956_v18 = vpack.c.bf16 %v241_v34, %v234_v29  ;;  %v15893_v29 = vand.u32 4294901760, %v14973_v2  ;;  %v12385_v34 = vld [vmem:[%s15880_s3] ss:$0 sm:$0xff]  ;;  %s14708_s3 = smov 64  }
  0x84   :  { %13937 = vmatprep.subr.bf16.mxu0 %v14851_v15  ;;  %14009 = vmatprep.subr.bf16.mxu1 %v14008_v63 }
  0x86   :  { %12899 = vmatmul.mubr.f32.vlgmr.msra.gmra.mrb[0].mxu0 %v14903_v44 }
  0x87   :  { %13939 = vmatpush3.bf16.msra.mxu0 %v14851_v15  ;;  %14011 = vmatpush3.bf16.msra.mxu1 %v14008_v63 }
  0x88   :  { %13941 = vmatprep.subr.bf16.mxu0 %v14857_v20  ;;  %14013 = vmatprep.subr.bf16.mxu1 %v14012_v10 }
  0x89   :  { %12917 = vmatprep.mubr.f32.mxu0 %v199_v47  ;;  %v14024_v47 = vpack.c.bf16 %v14973_v2, %v14971_v58 }
  0x8b   :  { %13943 = vmatpush3.bf16.msra.mxu0 %v14857_v20  ;;  %14015 = vmatpush3.bf16.msra.mxu1 %v14012_v10 }
  0x8c   :  { %13945 = vmatprep.subr.bf16.mxu0 %v14859_v21  ;;  %14017 = vmatprep.subr.bf16.mxu1 %v14016_v19 }
  0x8e   :  { %12994 = vmatmul.mubr.f32.vlgmr.msra.gmra.mrb[2].mxu1 %v14965_v45 }
  0x8f   :  { %13947 = vmatpush3.bf16.msra.mxu0 %v14859_v21  ;;  %14019 = vmatpush3.bf16.msra.mxu1 %v14016_v19 }
  0x90   :  { %13949 = vmatprep.subr.bf16.mxu0 %v14870_v28  ;;  %14021 = vmatprep.subr.bf16.mxu1 %v14020_v14 }
  0x91   :  { %13012 = vmatprep.mubr.f32.mxu1 %v14961_v0 }
  0x93   :  { %13951 = vmatpush3.bf16.msra.mxu0 %v14870_v28  ;;  %14023 = vmatpush3.bf16.msra.mxu1 %v14020_v14 }
  0x94   :  { %13953 = vmatprep.subr.bf16.mxu0 %v13952_v37  ;;  %14025 = vmatprep.subr.bf16.mxu1 %v14024_v47 }
  0x96   :  { %12918 = vmatmul.mubr.f32.vlgmr.msra.gmra.mrb[0].mxu0 %v209_v52 }
  0x97   :  { %13955 = vmatpush3.bf16.msra.mxu0 %v13952_v37  ;;  %14027 = vmatpush3.bf16.msra.mxu1 %v14024_v47 }
  0x98   :  { %13957 = vmatprep.subr.bf16.mxu0 %v13956_v18  ;;  %14029 = vmatprep.subr.bf16.mxu1 %v14028_v16 }
  0x99   :  { %12936 = vmatprep.mubr.f32.mxu0 %v14873_v30 }
  0x9b   :  { %13959 = vmatpush3.bf16.msra.mxu0 %v13956_v18  ;;  %14031 = vmatpush3.bf16.msra.mxu1 %v14028_v16 }
  0x9c   :  { %13961 = vmatprep.subr.bf16.mxu0 %v13960_v17  ;;  %14033 = vmatprep.subr.bf16.mxu1 %v14930_v5 }
  0x9e   :  { %13013 = vmatmul.mubr.f32.vlgmr.msra.gmra.mrb[2].mxu1 %v14983_v13 }
  0x9f   :  { %13963 = vmatpush3.bf16.msra.mxu0 %v13960_v17  ;;  %14035 = vmatpush3.bf16.msra.mxu1 %v14930_v5 }
  0xa0   :  { %13965 = vmatprep.subr.bf16.mxu0 %v13964_v23  ;;  %14037 = vmatprep.subr.bf16.mxu1 %v14941_v31 }
  0xa1   :  { %13031 = vmatprep.mubr.f32.mxu1 %v800_v8 }
  0xa3   :  { %13967 = vmatpush3.bf16.msra.mxu0 %v13964_v23  ;;  %14039 = vmatpush3.bf16.msra.mxu1 %v14941_v31 }
  0xa4   :  { %13969 = vmatprep.subr.bf16.mxu0 %v14851_v15  ;;  %14041 = vmatprep.subr.bf16.mxu1 %v14954_v56 }
  0xa6   :  { %12937 = vmatmul.mubr.f32.vlgmr.msra.gmra.mrb[0].mxu0 %v14884_v35 }
  0xa7   :  { %13971 = vmatpush3.bf16.msra.mxu0 %v14851_v15  ;;  %14043 = vmatpush3.bf16.msra.mxu1 %v14954_v56  ;;  %v15890_v15 = vand.u32 4294901760, %v14957_v60 }
  0xa8   :  { %13973 = vmatprep.subr.bf16.mxu0 %v14857_v20  ;;  %14045 = vmatprep.subr.bf16.mxu1 %v14999_v22 }
  0xa9   :  { %12955 = vmatprep.mubr.f32.mxu0 %v14873_v30  ;;  %v14052_v25 = vpack.c.bf16 %v842_v4, %v15890_v15 }
  0xab   :  { %13975 = vmatpush3.bf16.msra.mxu0 %v14857_v20  ;;  %14047 = vmatpush3.bf16.msra.mxu1 %v14999_v22  ;;  %v15892_v20 = vand.u32 4294901760, %v14971_v58 }
  0xac   :  { %13977 = vmatprep.subr.bf16.mxu0 %v14859_v21  ;;  %14049 = vmatprep.subr.bf16.mxu1 %v14048_v24 }
  0xad   :  { %v14056_v30 = vpack.c.bf16 %v15893_v29, %v15892_v20 }
  0xae   :  { %13032 = vmatmul.mubr.f32.vlgmr.msra.gmra.mrb[2].mxu1 %v15891_v26 }
  0xaf   :  { %13979 = vmatpush3.bf16.msra.mxu0 %v14859_v21  ;;  %14051 = vmatpush3.bf16.msra.mxu1 %v14048_v24  ;;  %v14060_v21 = vpack.c.bf16 %v870_v11, %v863_v32 }
  0xb0   :  { %13981 = vmatprep.subr.bf16.mxu0 %v14870_v28  ;;  %14053 = vmatprep.subr.bf16.mxu1 %v14052_v25 }
  0xb1   :  { %13050 = vmatprep.mubr.f32.mxu1 %v14947_v50 }
  0xb3   :  { %13983 = vmatpush3.bf16.msra.mxu0 %v14870_v28  ;;  %14055 = vmatpush3.bf16.msra.mxu1 %v14052_v25  ;;  %v14706_v28 = vmov 0.0  }
  0xb4   :  { %14057 = vmatprep.subr.bf16.mxu1 %v14056_v30  ;;  %13082 = vmatprep.subr.mxu0 %v14706_v28 }
  0xb6   :  { %12956 = vmatmul.mubr.f32.vlgmr.msra.gmra.mrb[0].mxu0 %v14884_v35 }
  0xb7   :  { %14059 = vmatpush3.bf16.msra.mxu1 %v14056_v30  ;;  %13084 = vmatprep.mubr.msk.f32.mxu0 %vm14707_vm1, %v14706_v28 }
  0xb8   :  { %14061 = vmatprep.subr.bf16.mxu1 %v14060_v21 }
  0xbb   :  { %14063 = vmatpush3.bf16.msra.mxu1 %v14060_v21 }
  0xbc   :  { %14065 = vmatprep.subr.bf16.mxu1 %v14930_v5 }
  0xbe   :  { %13051 = vmatmul.mubr.f32.vlgmr.msra.gmra.mrb[2].mxu1 %v14965_v45 }
  0xbf   :  { %14067 = vmatpush3.bf16.msra.mxu1 %v14930_v5  ;;  %13069 = vmatprep.mubr.f32.mxu1 %v14947_v50 }
  0xc0   :  { %14069 = vmatprep.subr.bf16.mxu1 %v14941_v31 }
  0xc3   :  { %14071 = vmatpush3.bf16.msra.mxu1 %v14941_v31 }
  0xc4   :  { %14073 = vmatprep.subr.bf16.mxu1 %v14954_v56 }
  0xc7   :  { %14075 = vmatpush3.bf16.msra.mxu1 %v14954_v56 }
  0xc8   :  { %14077 = vmatprep.subr.bf16.mxu1 %v14999_v22 }
  0xcb   :  { %14079 = vmatpush3.bf16.msra.mxu1 %v14999_v22  ;;  %v1305_v22 = vlaneseq }
  0xcc   :  { %13072 = vmatprep.subr.mxu1 %v14706_v28 }
  0xcd   :  { %v1306_v55 = vshrl.u32 %v1305_v22, 7  ;;  %v1308_v9 = vand.u32 127, %v1305_v22 }
  0xce   :  { %13070 = vmatmul.mubr.f32.vlgmr.msra.gmra.mrb[2].mxu1 %v14965_v45 }
  0xcf   :  { %13074 = vmatprep.mubr.msk.f32.mxu1 %vm14707_vm1, %v14706_v28  ;;  %vm1309_vm3 = vcmp.gt.s32.totalorder %v1308_v9, %v1306_v55 }
  0xd0   :  { %v15181_v12 = vsel %vm1309_vm3, -1e+30, %v14706_v28 }
 0x141   :  { %v12862_v35 = vpop.f32.mrb[0].mxu1 }
 0x142   :  { %v214_v38 = vadd.f32 %v12862_v35, %v12385_v34  ;;  %v203_v39 = vpop.f32.mrb[1].mxu1 }
 0x143   :  { %v204_v44 = vadd.f32 %v12385_v34, %v203_v39 }
 0x189   :  { %v12957_v48 = vpop.f32.mrb[0].mxu0 }
 0x18a   :  { %v15136_v49 = vadd.f32 %v12957_v48, %v214_v38  ;;  %v694_v52 = vpop.f32.mrb[1].mxu0 }
 0x18b   :  { %v15138_v61 = vadd.f32 %v694_v52, %v204_v44 }
 0x18d   :  { %v1328_v62 = vsel %vm1326_vm2, %v15138_v61, 0 }
 0x18e   :  { %v1399_v5 = vand.u32 4294901760, %v1328_v62 }
 0x190   :  { %v1400_v6 = vsub.f32 %v1328_v62, %v1399_v5 }
 0x192   :  { %v1401_v50 = vand.u32 4294901760, %v1400_v6 }
 0x194   :  { %v1402_v0 = vsub.f32 %v1400_v6, %v1401_v50 }
 0x196   :  { %v1403_v45 = vand.u32 4294901760, %v1402_v0 }
 0x1a1   :  { %v13071_v31 = vpop.f32.mrb[2].mxu1 }
 0x1a2   :  { %v15145_v51 = vadd.f32 %v13071_v31, %v12386_v7  ;;  %v1295_v54 = vpop.f32.mrb[3].mxu1 }
 0x1a3   :  { %v15147_v56 = vadd.f32 %v12386_v7, %v1295_v54 }
 0x1a5   :  { %1791 = vrot.lane.b32.xlu1 %v15147_v56, %s14708_s3  ;;  %v1331_v60 = vsel %vm1326_vm2, %v15147_v56, 0 }
 0x1a6   :  { %v1334_v1 = vand.u32 4294901760, %v1331_v60 }
 0x1a8   :  { %13073 = vmatpush3.xpose.msra.mxu1 %v1334_v1  ;;  %v1411_v40 = vsub.f32 %v1331_v60, %v1334_v1 }
 0x1a9   :  { %2706 = vrot.lane.b32.xlu1 %v15138_v61, %s14709_s24  ;;  %13077 = vmatprep.subr.mxu1 %v14706_v28 }
 0x1aa   :  { %13083 = vmatpush3.xpose.msra.mxu0 %v1411_v40  ;;  %v1412_v53 = vand.u32 4294901760, %v1411_v40 }
 0x1ab   :  { %13075 = vmatmul.mubr.f32.vlgmr.msra.gmra.mrb[4].mxu1 %v1403_v45  ;;  %13087 = vmatprep.subr.mxu0 %v14706_v28 }
 0x1ac   :  { %v1413_v57 = vsub.f32 %v1411_v40, %v1412_v53  ;;  %13079 = vmatprep.mubr.msk.f32.mxu1 %vm14707_vm1, %v14706_v28 }
 0x1ad   :  { %4086 = vrot.lane.b32.xlu1 %v15138_v61, %s14710_s5  ;;  %13085 = vmatmul.mubr.f32.vlgmr.msra.gmra.mrb[2].mxu0 %v1400_v6 }
 0x1ae   :  { %13088 = vmatpush3.xpose.msra.mxu0 %v1334_v1  ;;  %v1414_v58 = vand.u32 4294901760, %v1413_v57  ;;  %13089 = vmatprep.mubr.msk.f32.mxu0 %vm14707_vm1, %v14706_v28 }
 0x1af   :  { %13092 = vmatprep.subr.mxu0 %v14706_v28 }
 0x1b0   :  { %13078 = vmatpush3.xpose.msra.mxu1 %v1414_v58 }
 0x1b1   :  { %4088 = vrot.lane.b32.xlu1 %v15147_v56, %s14710_s5  ;;  %13102 = vmatprep.subr.mxu1 %v14706_v28 }
 0x1b3   :  { %13080 = vmatmul.mubr.f32.vlgmr.msra.gmra.mrb[4].mxu1 %v1399_v5 }
 0x1b4   :  { %13104 = vmatprep.mubr.msk.f32.mxu1 %vm14707_vm1, %v14706_v28 }
 0x1b5   :  { %13090 = vmatmul.mubr.f32.vlgmr.msra.gmra.mrb[2].mxu0 %v1401_v50 }
 0x1b6   :  { %13093 = vmatpush3.xpose.msra.mxu0 %v1412_v53  ;;  %13094 = vmatprep.mubr.msk.f32.mxu0 %vm14707_vm1, %v14706_v28 }
 0x1b7   :  { %13097 = vmatprep.subr.mxu0 %v14706_v28 }
 0x1bd   :  { %13095 = vmatmul.mubr.f32.vlgmr.msra.gmra.mrb[2].mxu0 %v1399_v5 }
 0x1be   :  { %13098 = vmatpush3.xpose.msra.mxu0 %v1334_v1  ;;  %13099 = vmatprep.mubr.msk.f32.mxu0 %vm14707_vm1, %v14706_v28 }
 0x1c5   :  { %13100 = vmatmul.mubr.f32.vlgmr.msra.gmra.mrb[2].mxu0 %v1399_v5 }
 0x1c6   :  { %13136 = vmatprep.mubr.msk.f32.mxu0 %vm14707_vm1, %v14706_v28 }
 0x217   :  { %v1792_v2 = vpop.permute.xlu1 %1791 }
 0x218   :  { %v15176_v8 = vand.u32 4294901760, %v1792_v2 }
 0x21a   :  { %13103 = vmatpush3.msra.mxu1 %v15176_v8  ;;  %v1875_v10 = vsub.f32 %v1792_v2, %v15176_v8  ;;  %v1312_v2 = vld [vmem:[#allocation10] sm:$0xff] }
 0x21b   :  { %13107 = vmatprep.subr.mxu1 %v14706_v28  ;;  %v2707_v25 = vpop.permute.xlu1 %2706 }
 0x21c   :  { %v1876_v47 = vand.u32 4294901760, %v1875_v10  ;;  %v2710_v20 = vsel %vm1326_vm2, %v2707_v25, 0 }
 0x21d   :  { %v2780_v30 = vand.u32 4294901760, %v2710_v20 }
 0x21e   :  { %v1877_v17 = vsub.f32 %v1875_v10, %v1876_v47 }
 0x21f   :  { %v2781_v34 = vsub.f32 %v2710_v20, %v2780_v30  ;;  %v4087_v5 = vpop.permute.xlu1 %4086 }
 0x220   :  { %v1878_v15 = vand.u32 4294901760, %v1877_v17  ;;  %v4090_v7 = vsel %vm1326_vm2, %v4087_v5, 0 }
 0x221   :  { %v2782_v38 = vand.u32 4294901760, %v2781_v34  ;;  %v4160_v50 = vand.u32 4294901760, %v4090_v7 }
 0x223   :  { %v2783_v44 = vsub.f32 %v2781_v34, %v2782_v38  ;;  %v4089_v6 = vpop.permute.xlu1 %4088  ;;  %v4161_v60 = vsub.f32 %v4090_v7, %v4160_v50 }
 0x224   :  { %v4092_v31 = vsel %vm1326_vm2, %v4089_v6, 0 }
 0x225   :  { %v2784_v52 = vand.u32 4294901760, %v2783_v44  ;;  %v4095_v54 = vand.u32 4294901760, %v4092_v31  ;;  %v4162_v1 = vand.u32 4294901760, %v4161_v60 }
 0x227   :  { %v4172_v0 = vsub.f32 %v4092_v31, %v4095_v54  ;;  %v4163_v45 = vsub.f32 %v4161_v60, %v4162_v1 }
 0x229   :  { %v4173_v40 = vand.u32 4294901760, %v4172_v0  ;;  %v4164_v57 = vand.u32 4294901760, %v4163_v45 }
 0x22b   :  { %v4174_v53 = vsub.f32 %v4172_v0, %v4173_v40 }
 0x22d   :  { %v4175_v58 = vand.u32 4294901760, %v4174_v53 }
 0x286   :  { %v1481_v13 = vpop.f32.mrb[4].mxu1 }
 0x287   :  { %v13081_v4 = vpop.f32.mrb[5].mxu1  ;;  %v14230_v42 = vadd.f32 %v1481_v13, %v15181_v12  ;;  %v2247_v13 = vand.u32 4294901760, %v1312_v2 }
 0x289   :  { %v2325_v55 = vsub.f32 %v1312_v2, %v2247_v13 }
 0x298   :  { %v1775_v27 = vpop.f32.mrb[2].mxu0 }
 0x299   :  { %v14231_v46 = vadd.f32 %v14230_v42, %v1775_v27  ;;  %v13101_v32 = vpop.f32.mrb[3].mxu0  ;;  %v14711_v42 = vmov 0.0|0.0   ;;  %v2326_v27 = vand.u32 4294901760, %v2325_v55 }
 0x29a   :  { %14080 = vmatprep.subr.bf16.mxu0 %v14711_v42 }
 0x29b   :  { %v1780_v11 = vsel %vm1779_vm4, %v14231_v46, -inf  ;;  %v2327_v32 = vsub.f32 %v2325_v55, %v2326_v27 }
 0x29c   :  { %1781 = vmax.xlane.f32.xlu0 %v1780_v11 }
 0x329   :  { %v1782_v3 = vpop.xlane.xlu0 %1781 }
 0x32a   :  { %v1783_v33 = vsub.f32 %v14231_v46, %v1782_v3  ;;  %v2328_v3 = vand.u32 4294901760, %v2327_v32 }
 0x32c   :  { %v1784_v36 = vmul.f32 1.442695, %v1783_v33 }
 0x32e   :  { %14527 = vpow2.f32 %v1784_v36 }
 0x338   :  { %v14528_v41 = vpop.eup %14527 }
 0x339   :  { %v1786_v63 = vsel %vm1779_vm4, %v14528_v41, 0.0 }
 0x33a   :  { %1787 = vadd.xlane.f32.xlu0 %v1786_v63 }
 0x350   :  { %2708 = vrot.lane.b32.xlu0 %v15147_v56, %s14709_s24 }
 0x3c7   :  { %v1788_v43 = vpop.xlane.xlu0 %1787 }
 0x3c8   :  { %14529 = vrcp.f32 %v1788_v43 }
 0x3cb   :  { %v2709_v26 = vpop.permute.xlu0 %2708 }
 0x3cc   :  { %v2712_v29 = vsel %vm1326_vm2, %v2709_v26, 0 }
 0x3cd   :  { %v2715_v21 = vand.u32 4294901760, %v2712_v29 }
 0x3cf   :  { %v2792_v35 = vsub.f32 %v2712_v29, %v2715_v21 }
 0x3d1   :  { %v2793_v39 = vand.u32 4294901760, %v2792_v35 }
 0x3d2   :  { %v14530_v59 = vpop.eup %14529 }
 0x3d3   :  { %v1790_v19 = vmul.f32 %v14530_v59, %v14528_v41  ;;  %v2794_v48 = vsub.f32 %v2792_v35, %v2793_v39 }
 0x3d5   :  { %v1795_v14 = vsel %vm1779_vm4, %v1790_v19, 0  ;;  %v2795_v62 = vand.u32 4294901760, %v2794_v48 }
 0x3d6   :  { %v1863_v37 = vand.u32 4294901760, %v1795_v14 }
 0x3d8   :  { %v1864_v18 = vsub.f32 %v1795_v14, %v1863_v37 }
 0x3da   :  { %v1865_v16 = vand.u32 4294901760, %v1864_v18 }
 0x3dc   :  { %v1866_v23 = vsub.f32 %v1864_v18, %v1865_v16 }
 0x3de   :  { %v1867_v24 = vand.u32 4294901760, %v1866_v23 }
 0x3e0   :  { %13105 = vmatmul.mubr.f32.vlgmr.msra.gmra.mrb[6].mxu1 %v1867_v24 }
 0x3e1   :  { %13108 = vmatpush3.msra.mxu1 %v1878_v15  ;;  %13109 = vmatprep.mubr.msk.f32.mxu1 %vm14707_vm1, %v14706_v28 }
 0x3e2   :  { %13112 = vmatprep.subr.mxu1 %v14706_v28 }
 0x3e8   :  { %13110 = vmatmul.mubr.f32.vlgmr.msra.gmra.mrb[6].mxu1 %v1863_v37 }
 0x3e9   :  { %13113 = vmatpush3.msra.mxu1 %v1875_v10  ;;  %13114 = vmatprep.mubr.msk.f32.mxu1 %vm14707_vm1, %v14706_v28 }
 0x3ea   :  { %13117 = vmatprep.subr.mxu1 %v14706_v28 }
 0x3f0   :  { %13115 = vmatmul.mubr.f32.vlgmr.msra.gmra.mrb[6].mxu1 %v1864_v18 }
 0x3f1   :  { %13118 = vmatpush3.msra.mxu1 %v15176_v8  ;;  %13119 = vmatprep.mubr.msk.f32.mxu1 %vm14707_vm1, %v14706_v28 }
 0x3f2   :  { %13122 = vmatprep.subr.mxu1 %v14706_v28 }
 0x3f8   :  { %13120 = vmatmul.mubr.f32.vlgmr.msra.gmra.mrb[6].mxu1 %v1865_v16 }
 0x3f9   :  { %13123 = vmatpush3.msra.mxu1 %v1876_v47  ;;  %13124 = vmatprep.mubr.msk.f32.mxu1 %vm14707_vm1, %v14706_v28 }
 0x3fa   :  { %13127 = vmatprep.subr.mxu1 %v14706_v28 }
 0x400   :  { %13125 = vmatmul.mubr.f32.vlgmr.msra.gmra.mrb[6].mxu1 %v1863_v37 }
 0x401   :  { %13128 = vmatpush3.msra.mxu1 %v15176_v8  ;;  %13129 = vmatprep.mubr.msk.f32.mxu1 %vm14707_vm1, %v14706_v28  ;;  %v1313_v8 = vld [vmem:[#allocation10 + $0x8] sm:$0xff] }
 0x402   :  { %13174 = vmatprep.subr.mxu1 %v14706_v28  ;;  %v2250_v4 = vand.u32 4294901760, %v1313_v8 }
 0x404   :  { %v15249_v22 = vpack.c.bf16 %v2250_v4, %v2247_v13  ;;  %v2332_v9 = vsub.f32 %v1313_v8, %v2250_v4 }
 0x406   :  { %14082 = vmatpush3.bf16.msra.mxu0 %v15249_v22  ;;  %v2333_v46 = vand.u32 4294901760, %v2332_v9  ;;  %v15256_v41 = vpack.c.bf16 %v2332_v9, %v2325_v55 }
 0x407   :  { %14083 = vmatprep.subr.bf16.mxu0 %v14711_v42 }
 0x408   :  { %13130 = vmatmul.mubr.f32.vlgmr.msra.gmra.mrb[6].mxu1 %v1863_v37  ;;  %v2334_v11 = vsub.f32 %v2332_v9, %v2333_v46  ;;  %v15258_v63 = vpack.c.bf16 %v2333_v46, %v2326_v27 }
 0x409   :  { %13175 = vmatpush3.xpose.msra.mxu1 %v2715_v21  ;;  %13176 = vmatprep.mubr.msk.f32.mxu1 %vm14707_vm1, %v14706_v28 }
 0x40a   :  { %13179 = vmatprep.subr.mxu1 %v14706_v28  ;;  %v2335_v33 = vand.u32 4294901760, %v2334_v11 }
 0x40c   :  { %13177 = vmatmul.mubr.f32.vlgmr.msra.gmra.mrb[8].mxu1 %v2784_v52  ;;  %v15254_v36 = vpack.c.bf16 %v2335_v33, %v2328_v3 }
 0x40d   :  { %13180 = vmatpush3.xpose.msra.mxu1 %v2795_v62  ;;  %13181 = vmatprep.mubr.msk.f32.mxu1 %vm14707_vm1, %v14706_v28 }
 0x40e   :  { %13184 = vmatprep.subr.mxu1 %v14706_v28 }
 0x414   :  { %13182 = vmatmul.mubr.f32.vlgmr.msra.gmra.mrb[8].mxu1 %v2780_v30 }
 0x415   :  { %13185 = vmatpush3.xpose.msra.mxu1 %v2792_v35  ;;  %13186 = vmatprep.mubr.msk.f32.mxu1 %vm14707_vm1, %v14706_v28 }
 0x416   :  { %13189 = vmatprep.subr.mxu1 %v14706_v28 }
 0x41c   :  { %13187 = vmatmul.mubr.f32.vlgmr.msra.gmra.mrb[8].mxu1 %v2781_v34 }
 0x41d   :  { %13190 = vmatpush3.xpose.msra.mxu1 %v2715_v21  ;;  %13191 = vmatprep.mubr.msk.f32.mxu1 %vm14707_vm1, %v14706_v28 }
 0x41e   :  { %13194 = vmatprep.subr.mxu1 %v14706_v28 }
 0x424   :  { %13192 = vmatmul.mubr.f32.vlgmr.msra.gmra.mrb[8].mxu1 %v2782_v38 }
 0x425   :  { %13195 = vmatpush3.xpose.msra.mxu1 %v2793_v39  ;;  %13196 = vmatprep.mubr.msk.f32.mxu1 %vm14707_vm1, %v14706_v28 }
 0x426   :  { %13199 = vmatprep.subr.mxu1 %v14706_v28 }
 0x42c   :  { %13197 = vmatmul.mubr.f32.vlgmr.msra.gmra.mrb[8].mxu1 %v2780_v30 }
 0x42d   :  { %13200 = vmatpush3.xpose.msra.mxu1 %v2715_v21  ;;  %13201 = vmatprep.mubr.msk.f32.mxu1 %vm14707_vm1, %v14706_v28 }
 0x42e   :  { %13276 = vmatprep.subr.mxu1 %v14706_v28 }
 0x434   :  { %13202 = vmatmul.mubr.f32.vlgmr.msra.gmra.mrb[8].mxu1 %v2780_v30 }
 0x435   :  { %13277 = vmatpush3.xpose.msra.mxu1 %v4095_v54  ;;  %13278 = vmatprep.mubr.msk.f32.mxu1 %vm14707_vm1, %v14706_v28 }
 0x436   :  { %13281 = vmatprep.subr.mxu1 %v14706_v28 }
 0x438   :  { %13279 = vmatmul.mubr.f32.vlgmr.msra.gmra.mrb[10].mxu1 %v4164_v57 }
 0x439   :  { %13282 = vmatpush3.xpose.msra.mxu1 %v4175_v58  ;;  %13283 = vmatprep.mubr.msk.f32.mxu1 %vm14707_vm1, %v14706_v28 }
 0x43a   :  { %13286 = vmatprep.subr.mxu1 %v14706_v28 }
 0x440   :  { %13284 = vmatmul.mubr.f32.vlgmr.msra.gmra.mrb[10].mxu1 %v4160_v50 }
 0x441   :  { %13287 = vmatpush3.xpose.msra.mxu1 %v4172_v0  ;;  %13288 = vmatprep.mubr.msk.f32.mxu1 %vm14707_vm1, %v14706_v28 }
 0x442   :  { %13291 = vmatprep.subr.mxu1 %v14706_v28 }
 0x448   :  { %13289 = vmatmul.mubr.f32.vlgmr.msra.gmra.mrb[10].mxu1 %v4161_v60 }
 0x449   :  { %13292 = vmatpush3.xpose.msra.mxu1 %v4095_v54  ;;  %13293 = vmatprep.mubr.msk.f32.mxu1 %vm14707_vm1, %v14706_v28 }
 0x44a   :  { %13296 = vmatprep.subr.mxu1 %v14706_v28 }
 0x450   :  { %13294 = vmatmul.mubr.f32.vlgmr.msra.gmra.mrb[10].mxu1 %v4162_v1 }
 0x451   :  { %13297 = vmatpush3.xpose.msra.mxu1 %v4173_v40  ;;  %13298 = vmatprep.mubr.msk.f32.mxu1 %vm14707_vm1, %v14706_v28 }
 0x452   :  { %13301 = vmatprep.subr.mxu1 %v14706_v28 }
 0x458   :  { %13299 = vmatmul.mubr.f32.vlgmr.msra.gmra.mrb[10].mxu1 %v4160_v50 }
 0x459   :  { %13302 = vmatpush3.xpose.msra.mxu1 %v4095_v54  ;;  %13303 = vmatprep.mubr.msk.f32.mxu1 %vm14707_vm1, %v14706_v28 }
 0x45a   :  { %13306 = vmatprep.subr.mxu1 %v14706_v28 }
 0x460   :  { %13304 = vmatmul.mubr.f32.vlgmr.msra.gmra.mrb[10].mxu1 %v4160_v50 }
 0x461   :  { %13308 = vmatprep.mubr.msk.f32.mxu1 %vm14707_vm1, %v14706_v28 }
 0x4db   :  { %v2239_v43 = vpop.f32.mrb[6].mxu1 }
 0x4dc   :  { %v2244_v59 = vsel %vm1326_vm2, %v2239_v43, 0  ;;  %v13131_v10 = vpop.f32.mrb[7].mxu1 }
 0x4dd   :  { %v2313_v19 = vand.u32 4294901760, %v2244_v59 }
 0x4df   :  { %v2314_v14 = vsub.f32 %v2244_v59, %v2313_v19 }
 0x4e1   :  { %v2315_v37 = vand.u32 4294901760, %v2314_v14 }
 0x4e3   :  { %v2316_v47 = vsub.f32 %v2314_v14, %v2315_v37 }
 0x4e5   :  { %v2317_v18 = vand.u32 4294901760, %v2316_v47 }
 0x4e7   :  { %13137 = vmatmul.mubr.f32.vlgmr.msra.gmra.mrb[4].mxu0 %v2317_v18 }
 0x4e8   :  { %14085 = vmatpush3.bf16.msra.mxu0 %v15254_v36  ;;  %13143 = vmatprep.mubr.msk.f32.mxu0 %vm14707_vm1, %v14706_v28 }
 0x4e9   :  { %14086 = vmatprep.subr.bf16.mxu0 %v14711_v42 }
 0x4ef   :  { %13144 = vmatmul.mubr.f32.vlgmr.msra.gmra.mrb[4].mxu0 %v2313_v19 }
 0x4f0   :  { %14088 = vmatpush3.bf16.msra.mxu0 %v15256_v41  ;;  %13150 = vmatprep.mubr.msk.f32.mxu0 %vm14707_vm1, %v14706_v28 }
 0x4f1   :  { %14089 = vmatprep.subr.bf16.mxu0 %v14711_v42 }
 0x4f7   :  { %13151 = vmatmul.mubr.f32.vlgmr.msra.gmra.mrb[4].mxu0 %v2314_v14 }
 0x4f8   :  { %14091 = vmatpush3.bf16.msra.mxu0 %v15249_v22  ;;  %13157 = vmatprep.mubr.msk.f32.mxu0 %vm14707_vm1, %v14706_v28 }
 0x4f9   :  { %14092 = vmatprep.subr.bf16.mxu0 %v14711_v42 }
 0x4ff   :  { %13158 = vmatmul.mubr.f32.vlgmr.msra.gmra.mrb[4].mxu0 %v2315_v37 }
 0x500   :  { %14094 = vmatpush3.bf16.msra.mxu0 %v15258_v63  ;;  %13164 = vmatprep.mubr.msk.f32.mxu0 %vm14707_vm1, %v14706_v28 }
 0x501   :  { %14095 = vmatprep.subr.bf16.mxu0 %v14711_v42 }
 0x507   :  { %13165 = vmatmul.mubr.f32.vlgmr.msra.gmra.mrb[4].mxu0 %v2313_v19  ;;  %v3156_v16 = vpop.f32.mrb[8].mxu1 }
 0x508   :  { %v13203_v17 = vpop.f32.mrb[9].mxu1  ;;  %14097 = vmatpush3.bf16.msra.mxu0 %v15249_v22  ;;  %13171 = vmatprep.mubr.msk.f32.mxu0 %vm14707_vm1, %v14706_v28  ;;  %v14233_v26 = vadd.f32 %v3156_v16, %v15181_v12 }
 0x509   :  { %13204 = vmatprep.subr.mxu0 %v14706_v28 }
 0x50a   :  { %v3160_v20 = vsel %vm1779_vm4, %v14233_v26, -inf }
 0x50f   :  { %13172 = vmatmul.mubr.f32.vlgmr.msra.gmra.mrb[4].mxu0 %v2313_v19 }
 0x510   :  { %13206 = vmatprep.mubr.msk.f32.mxu0 %vm14707_vm1, %v14706_v28 }
 0x533   :  { %v4536_v23 = vpop.f32.mrb[10].mxu1 }
 0x534   :  { %v14234_v24 = vadd.f32 %v4536_v23, %v15181_v12  ;;  %v13305_v15 = vpop.f32.mrb[11].mxu1 }
 0x536   :  { %v4540_v25 = vsel %vm1779_vm4, %v14234_v24, -inf }
 0x537   :  { %4541 = vmax.xlane.f32.xlu1 %v4540_v25 }
 0x548   :  { %4551 = vrot.lane.b32.xlu1 %v15147_v56, %s14712_s25 }
 0x54c   :  { %5468 = vrot.lane.b32.xlu1 %v15147_v56, %s14713_s26 }
 0x570   :  { %3161 = vmax.xlane.f32.xlu1 %v3160_v20 }
 0x5c4   :  { %v4542_v29 = vpop.xlane.xlu1 %4541 }
 0x5c5   :  { %v4543_v30 = vsub.f32 %v14234_v24, %v4542_v29  ;;  %v6848_v29 = vsel %vm1326_vm2, %v15136_v49, 0 }
 0x5c7   :  { %v4544_v21 = vmul.f32 1.442695, %v4543_v30  ;;  %v6851_v30 = vsel %vm1326_vm2, %v15145_v51, 0 }
 0x5c8   :  { %v4552_v34 = vpop.permute.xlu1 %4551 }
 0x5c9   :  { %14531 = vpow2.f32 %v4544_v21  ;;  %v4558_v35 = vand.u32 4294901760, %v4552_v34  ;;  %v6919_v21 = vand.u32 4294901760, %v6848_v29 }
 0x5cb   :  { %13307 = vmatpush3.msra.mxu1 %v4558_v35  ;;  %v4635_v31 = vsub.f32 %v4552_v34, %v4558_v35  ;;  %v6854_v34 = vand.u32 4294901760, %v6851_v30 }
 0x5cc   :  { %13311 = vmatprep.subr.mxu1 %v14706_v28  ;;  %v5469_v44 = vpop.permute.xlu1 %5468 }
 0x5cd   :  { %v4636_v0 = vand.u32 4294901760, %v4635_v31  ;;  %v5472_v13 = vsel %vm1326_vm2, %v5469_v44, 0 }
 0x5ce   :  { %v15324_v55 = vand.u32 4294901760, %v5472_v13 }
 0x5cf   :  { %v4637_v45 = vsub.f32 %v4635_v31, %v4636_v0 }
 0x5d0   :  { %v5552_v27 = vsub.f32 %v5472_v13, %v15324_v55 }
 0x5d1   :  { %v4638_v58 = vand.u32 4294901760, %v4637_v45 }
 0x5d2   :  { %v5553_v11 = vand.u32 4294901760, %v5552_v27 }
 0x5d3   :  { %v14532_v38 = vpop.eup %14531 }
 0x5d4   :  { %v4546_v39 = vsel %vm1779_vm4, %v14532_v38, 0.0  ;;  %v5554_v59 = vsub.f32 %v5552_v27, %v5553_v11 }
 0x5d5   :  { %4547 = vadd.xlane.f32.xlu0 %v4546_v39 }
 0x5d6   :  { %v5555_v14 = vand.u32 4294901760, %v5554_v59 }
 0x5eb   :  { %5466 = vrot.lane.b32.xlu0 %v15138_v61, %s14713_s26 }
 0x5fd   :  { %v3162_v48 = vpop.xlane.xlu1 %3161 }
 0x5fe   :  { %v3163_v52 = vsub.f32 %v14233_v26, %v3162_v48 }
 0x600   :  { %v3164_v62 = vmul.f32 1.442695, %v3163_v52 }
 0x602   :  { %14533 = vpow2.f32 %v3164_v62 }
 0x60c   :  { %v15295_v5 = vpop.eup %14533 }
 0x60d   :  { %v3166_v6 = vsel %vm1779_vm4, %v15295_v5, 0.0 }
 0x60e   :  { %3167 = vadd.xlane.f32.xlu1 %v3166_v6  ;;  %v1314_v6 = vld [vmem:[#allocation10 + $0x10] sm:$0xff] }
 0x61f   :  { %3171 = vrot.lane.b32.xlu1 %v15147_v56, %s14714_s27 }
 0x623   :  { %8225 = vrot.lane.b32.xlu1 %v15136_v49, %s14709_s24 }
 0x627   :  { %8227 = vrot.lane.b32.xlu1 %v15145_v51, %s14709_s24 }
 0x62b   :  { %9605 = vrot.lane.b32.xlu1 %v15136_v49, %s14710_s5 }
 0x662   :  { %v4548_v61 = vpop.xlane.xlu0 %4547 }
 0x663   :  { %14535 = vrcp.f32 %v4548_v61  ;;  %v1315_v61 = vld [vmem:[#allocation10 + $0x18] sm:$0xff] }
 0x666   :  { %v5467_v2 = vpop.permute.xlu0 %5466 }
 0x667   :  { %v5470_v8 = vsel %vm1326_vm2, %v5467_v2, 0 }
 0x668   :  { %v15321_v4 = vand.u32 4294901760, %v5470_v8 }
 0x66a   :  { %v5541_v9 = vsub.f32 %v5470_v8, %v15321_v4 }
 0x66c   :  { %v5542_v32 = vand.u32 4294901760, %v5541_v9 }
 0x66d   :  { %v14536_v7 = vpop.eup %14535 }
 0x66e   :  { %v4550_v50 = vmul.f32 %v14536_v7, %v14532_v38  ;;  %v5543_v43 = vsub.f32 %v5541_v9, %v5542_v32  ;;  %v6931_v38 = vsub.f32 %v6851_v30, %v6854_v34  ;;  %v3627_v7 = vand.u32 4294901760, %v1314_v6 }
 0x670   :  { %v4555_v54 = vsel %vm1779_vm4, %v4550_v50, 0  ;;  %v5544_v10 = vand.u32 4294901760, %v5543_v43  ;;  %v6932_v44 = vand.u32 4294901760, %v6931_v38 }
 0x671   :  { %v4623_v60 = vand.u32 4294901760, %v4555_v54 }
 0x672   :  { %v6933_v52 = vsub.f32 %v6931_v38, %v6932_v44 }
 0x673   :  { %v4624_v1 = vsub.f32 %v4555_v54, %v4623_v60  ;;  %v3705_v54 = vsub.f32 %v1314_v6, %v3627_v7 }
 0x675   :  { %v4625_v40 = vand.u32 4294901760, %v4624_v1 }
 0x677   :  { %v4626_v53 = vsub.f32 %v4624_v1, %v4625_v40 }
 0x679   :  { %v4627_v57 = vand.u32 4294901760, %v4626_v53 }
 0x67b   :  { %13309 = vmatmul.mubr.f32.vlgmr.msra.gmra.mrb[12].mxu1 %v4627_v57 }
 0x67c   :  { %13312 = vmatpush3.msra.mxu1 %v4638_v58  ;;  %13313 = vmatprep.mubr.msk.f32.mxu1 %vm14707_vm1, %v14706_v28 }
 0x67d   :  { %13316 = vmatprep.subr.mxu1 %v14706_v28 }
 0x683   :  { %13314 = vmatmul.mubr.f32.vlgmr.msra.gmra.mrb[12].mxu1 %v4623_v60 }
 0x684   :  { %13317 = vmatpush3.msra.mxu1 %v4635_v31  ;;  %13318 = vmatprep.mubr.msk.f32.mxu1 %vm14707_vm1, %v14706_v28  ;;  %v3630_v31 = vand.u32 4294901760, %v1315_v61 }
 0x685   :  { %13321 = vmatprep.subr.mxu1 %v14706_v28 }
 0x686   :  { %v15411_v50 = vpack.c.bf16 %v3630_v31, %v3627_v7 }
 0x68b   :  { %13319 = vmatmul.mubr.f32.vlgmr.msra.gmra.mrb[12].mxu1 %v4624_v1 }
 0x68c   :  { %13322 = vmatpush3.msra.mxu1 %v4558_v35  ;;  %13323 = vmatprep.mubr.msk.f32.mxu1 %vm14707_vm1, %v14706_v28 }
 0x68d   :  { %13326 = vmatprep.subr.mxu1 %v14706_v28 }
 0x693   :  { %13324 = vmatmul.mubr.f32.vlgmr.msra.gmra.mrb[12].mxu1 %v4625_v40 }
 0x694   :  { %13327 = vmatpush3.msra.mxu1 %v4636_v0  ;;  %13328 = vmatprep.mubr.msk.f32.mxu1 %vm14707_vm1, %v14706_v28  ;;  %v3706_v0 = vand.u32 4294901760, %v3705_v54 }
 0x695   :  { %13331 = vmatprep.subr.mxu1 %v14706_v28 }
 0x696   :  { %v3707_v40 = vsub.f32 %v3705_v54, %v3706_v0 }
 0x698   :  { %v3708_v53 = vand.u32 4294901760, %v3707_v40 }
 0x69b   :  { %13329 = vmatmul.mubr.f32.vlgmr.msra.gmra.mrb[12].mxu1 %v4623_v60  ;;  %v3168_v46 = vpop.xlane.xlu1 %3167 }
 0x69c   :  { %13332 = vmatpush3.msra.mxu1 %v4558_v35  ;;  %14537 = vrcp.f32 %v3168_v46  ;;  %13333 = vmatprep.mubr.msk.f32.mxu1 %vm14707_vm1, %v14706_v28  ;;  %v6920_v35 = vsub.f32 %v6848_v29, %v6919_v21 }
 0x69d   :  { %13378 = vmatprep.subr.mxu1 %v14706_v28 }
 0x69e   :  { %v6921_v39 = vand.u32 4294901760, %v6920_v35 }
 0x69f   :  { %v3172_v3 = vpop.permute.xlu1 %3171 }
 0x6a0   :  { %v15331_v33 = vand.u32 4294901760, %v3172_v3  ;;  %v6922_v48 = vsub.f32 %v6920_v35, %v6921_v39 }
 0x6a2   :  { %13205 = vmatpush3.msra.mxu0 %v15331_v33  ;;  %v3255_v47 = vsub.f32 %v3172_v3, %v15331_v33  ;;  %v6923_v62 = vand.u32 4294901760, %v6922_v48 }
 0x6a3   :  { %13334 = vmatmul.mubr.f32.vlgmr.msra.gmra.mrb[12].mxu1 %v4623_v60  ;;  %13209 = vmatprep.subr.mxu0 %v14706_v28  ;;  %v3712_v60 = vsub.f32 %v1315_v61, %v3630_v31 }
 0x6a4   :  { %13379 = vmatpush3.xpose.msra.mxu1 %v15324_v55  ;;  %13380 = vmatprep.mubr.msk.f32.mxu1 %vm14707_vm1, %v14706_v28  ;;  %v3256_v17 = vand.u32 4294901760, %v3255_v47 }
 0x6a5   :  { %13383 = vmatprep.subr.mxu1 %v14706_v28  ;;  %v3713_v1 = vand.u32 4294901760, %v3712_v60  ;;  %v15417_v2 = vpack.c.bf16 %v3712_v60, %v3705_v54 }
 0x6a6   :  { %v14538_v19 = vpop.eup %14537  ;;  %v3257_v15 = vsub.f32 %v3255_v47, %v3256_v17 }
 0x6a7   :  { %v3170_v37 = vmul.f32 %v14538_v19, %v15295_v5  ;;  %13381 = vmatmul.mubr.f32.vlgmr.msra.gmra.mrb[14].mxu1 %v5544_v10  ;;  %v6934_v5 = vand.u32 4294901760, %v6933_v52  ;;  %v3714_v45 = vsub.f32 %v3712_v60, %v3713_v1  ;;  %v15419_v8 = vpack.c.bf16 %v3713_v1, %v3706_v0  ;;  %v8226_v1 = vpop.permute.xlu1 %8225 }
 0x6a8   :  { %13384 = vmatpush3.xpose.msra.mxu1 %v5555_v14  ;;  %13385 = vmatprep.mubr.msk.f32.mxu1 %vm14707_vm1, %v14706_v28  ;;  %v3258_v20 = vand.u32 4294901760, %v3257_v15 }
 0x6a9   :  { %13388 = vmatprep.subr.mxu1 %v14706_v28  ;;  %v3175_v18 = vsel %vm1779_vm4, %v3170_v37, 0  ;;  %v3715_v57 = vand.u32 4294901760, %v3714_v45 }
 0x6aa   :  { %v15345_v16 = vand.u32 4294901760, %v3175_v18 }
 0x6ab   :  { %v15415_v58 = vpack.c.bf16 %v3715_v57, %v3708_v53  ;;  %v8228_v40 = vpop.permute.xlu1 %8227 }
 0x6ac   :  { %v3244_v23 = vsub.f32 %v3175_v18, %v15345_v16 }
 0x6ae   :  { %v3245_v24 = vand.u32 4294901760, %v3244_v23 }
 0x6af   :  { %13386 = vmatmul.mubr.f32.vlgmr.msra.gmra.mrb[14].mxu1 %v15321_v4  ;;  %v15489_v45 = vpop.permute.xlu1 %9605 }
 0x6b0   :  { %13389 = vmatpush3.xpose.msra.mxu1 %v5552_v27  ;;  %v3246_v25 = vsub.f32 %v3244_v23, %v3245_v24  ;;  %13390 = vmatprep.mubr.msk.f32.mxu1 %vm14707_vm1, %v14706_v28 }
 0x6b1   :  { %13393 = vmatprep.subr.mxu1 %v14706_v28 }
 0x6b2   :  { %v3247_v26 = vand.u32 4294901760, %v3246_v25 }
 0x6b4   :  { %13207 = vmatmul.mubr.f32.vlgmr.msra.gmra.mrb[6].mxu0 %v3247_v26 }
 0x6b5   :  { %13210 = vmatpush3.msra.mxu0 %v3258_v20  ;;  %13211 = vmatprep.mubr.msk.f32.mxu0 %vm14707_vm1, %v14706_v28 }
 0x6b6   :  { %13214 = vmatprep.subr.mxu0 %v14706_v28 }
 0x6b7   :  { %13391 = vmatmul.mubr.f32.vlgmr.msra.gmra.mrb[14].mxu1 %v5541_v9 }
 0x6b8   :  { %13394 = vmatpush3.xpose.msra.mxu1 %v15324_v55  ;;  %13395 = vmatprep.mubr.msk.f32.mxu1 %vm14707_vm1, %v14706_v28 }
 0x6b9   :  { %13398 = vmatprep.subr.mxu1 %v14706_v28 }
 0x6bc   :  { %13212 = vmatmul.mubr.f32.vlgmr.msra.gmra.mrb[6].mxu0 %v15345_v16 }
 0x6bd   :  { %13215 = vmatpush3.msra.mxu0 %v3255_v47  ;;  %13216 = vmatprep.mubr.msk.f32.mxu0 %vm14707_vm1, %v14706_v28 }
 0x6be   :  { %13219 = vmatprep.subr.mxu0 %v14706_v28 }
 0x6bf   :  { %13396 = vmatmul.mubr.f32.vlgmr.msra.gmra.mrb[14].mxu1 %v5542_v32 }
 0x6c0   :  { %13399 = vmatpush3.xpose.msra.mxu1 %v5553_v11  ;;  %13400 = vmatprep.mubr.msk.f32.mxu1 %vm14707_vm1, %v14706_v28 }
 0x6c1   :  { %13403 = vmatprep.subr.mxu1 %v14706_v28 }
 0x6c4   :  { %13217 = vmatmul.mubr.f32.vlgmr.msra.gmra.mrb[6].mxu0 %v3244_v23 }
 0x6c5   :  { %13220 = vmatpush3.msra.mxu0 %v15331_v33  ;;  %13221 = vmatprep.mubr.msk.f32.mxu0 %vm14707_vm1, %v14706_v28 }
 0x6c6   :  { %13224 = vmatprep.subr.mxu0 %v14706_v28 }
 0x6c7   :  { %13401 = vmatmul.mubr.f32.vlgmr.msra.gmra.mrb[14].mxu1 %v15321_v4 }
 0x6c8   :  { %13404 = vmatpush3.xpose.msra.mxu1 %v15324_v55  ;;  %13405 = vmatprep.mubr.msk.f32.mxu1 %vm14707_vm1, %v14706_v28 }
 0x6c9   :  { %13480 = vmatprep.subr.mxu1 %v14706_v28 }
 0x6cc   :  { %13222 = vmatmul.mubr.f32.vlgmr.msra.gmra.mrb[6].mxu0 %v3245_v24 }
 0x6cd   :  { %13225 = vmatpush3.msra.mxu0 %v3256_v17  ;;  %13226 = vmatprep.mubr.msk.f32.mxu0 %vm14707_vm1, %v14706_v28  ;;  %v1317_v17 = vld [vmem:[#allocation10 + $0x28] sm:$0xff] }
 0x6ce   :  { %13229 = vmatprep.subr.mxu0 %v14706_v28  ;;  %v5010_v24 = vand.u32 4294901760, %v1317_v17 }
 0x6cf   :  { %13406 = vmatmul.mubr.f32.vlgmr.msra.gmra.mrb[14].mxu1 %v15321_v4 }
 0x6d0   :  { %13481 = vmatpush3.xpose.msra.mxu1 %v6854_v34  ;;  %13482 = vmatprep.mubr.msk.f32.mxu1 %vm14707_vm1, %v14706_v28  ;;  %v5092_v26 = vsub.f32 %v1317_v17, %v5010_v24 }
 0x6d1   :  { %13485 = vmatprep.subr.mxu1 %v14706_v28 }
 0x6d2   :  { %v5093_v30 = vand.u32 4294901760, %v5092_v26 }
 0x6d3   :  { %13483 = vmatmul.mubr.f32.vlgmr.msra.gmra.mrb[16].mxu1 %v6923_v62 }
 0x6d4   :  { %13486 = vmatpush3.xpose.msra.mxu1 %v6934_v5  ;;  %13227 = vmatmul.mubr.f32.vlgmr.msra.gmra.mrb[6].mxu0 %v15345_v16 }
 0x6d5   :  { %13230 = vmatpush3.msra.mxu0 %v15331_v33  ;;  %13487 = vmatprep.mubr.msk.f32.mxu1 %vm14707_vm1, %v14706_v28 }
 0x6d6   :  { %13490 = vmatprep.subr.mxu1 %v14706_v28  ;;  %13231 = vmatprep.mubr.msk.f32.mxu0 %vm14707_vm1, %v14706_v28 }
 0x6d7   :  { %14098 = vmatprep.subr.bf16.mxu0 %v14711_v42 }
 0x6db   :  { %13488 = vmatmul.mubr.f32.vlgmr.msra.gmra.mrb[16].mxu1 %v6919_v21 }
 0x6dc   :  { %13491 = vmatpush3.xpose.msra.mxu1 %v6931_v38  ;;  %13232 = vmatmul.mubr.f32.vlgmr.msra.gmra.mrb[6].mxu0 %v15345_v16  ;;  %v1316_v16 = vld [vmem:[#allocation10 + $0x20] sm:$0xff]  ;;  %v5094_v38 = vsub.f32 %v5092_v26, %v5093_v30 }
 0x6dd   :  { %13492 = vmatprep.mubr.msk.f32.mxu1 %vm14707_vm1, %v14706_v28  ;;  %13495 = vmatprep.subr.mxu1 %v14706_v28  ;;  %v5007_v23 = vand.u32 4294901760, %v1316_v16 }
 0x6de   :  { %13238 = vmatprep.mubr.msk.f32.mxu0 %vm14707_vm1, %v14706_v28  ;;  %14100 = vmatpush3.bf16.msra.mxu0 %v15411_v50  ;;  %v5095_v48 = vand.u32 4294901760, %v5094_v38 }
 0x6df   :  { %14101 = vmatprep.subr.bf16.mxu0 %v14711_v42  ;;  %v5085_v25 = vsub.f32 %v1316_v16, %v5007_v23  ;;  %v8231_v16 = vsel %vm1326_vm2, %v8228_v40, 0 }
 0x6e1   :  { %v5086_v29 = vand.u32 4294901760, %v5085_v25  ;;  %v15462_v6 = vpack.c.bf16 %v5092_v26, %v5085_v25 }
 0x6e3   :  { %13493 = vmatmul.mubr.f32.vlgmr.msra.gmra.mrb[16].mxu1 %v6920_v35  ;;  %v5087_v35 = vsub.f32 %v5085_v25, %v5086_v29  ;;  %v15472_v61 = vpack.c.bf16 %v5093_v30, %v5086_v29 }
 0x6e4   :  { %13496 = vmatpush3.xpose.msra.mxu1 %v6854_v34  ;;  %13497 = vmatprep.mubr.msk.f32.mxu1 %vm14707_vm1, %v14706_v28 }
 0x6e5   :  { %13500 = vmatprep.subr.mxu1 %v14706_v28 }
 0x6eb   :  { %13498 = vmatmul.mubr.f32.vlgmr.msra.gmra.mrb[16].mxu1 %v6921_v39 }
 0x6ec   :  { %13501 = vmatpush3.xpose.msra.mxu1 %v6932_v44  ;;  %13502 = vmatprep.mubr.msk.f32.mxu1 %vm14707_vm1, %v14706_v28  ;;  %v5088_v44 = vand.u32 4294901760, %v5087_v35 }
 0x6ed   :  { %13505 = vmatprep.subr.mxu1 %v14706_v28 }
 0x6ee   :  { %v15456_v62 = vpack.c.bf16 %v5095_v48, %v5088_v44 }
 0x6f3   :  { %13503 = vmatmul.mubr.f32.vlgmr.msra.gmra.mrb[16].mxu1 %v6919_v21 }
 0x6f4   :  { %13506 = vmatpush3.xpose.msra.mxu1 %v6854_v34  ;;  %13507 = vmatprep.mubr.msk.f32.mxu1 %vm14707_vm1, %v14706_v28  ;;  %v15450_v34 = vpack.c.bf16 %v5010_v24, %v5007_v23  ;;  %v15516_v23 = vand.u32 4294901760, %v8231_v16 }
 0x6f5   :  { %13510 = vmatprep.subr.mxu1 %v14706_v28 }
 0x6f6   :  { %v8311_v25 = vsub.f32 %v8231_v16, %v15516_v23 }
 0x6f8   :  { %v8312_v29 = vand.u32 4294901760, %v8311_v25 }
 0x6fa   :  { %v8313_v38 = vsub.f32 %v8311_v25, %v8312_v29 }
 0x6fb   :  { %13508 = vmatmul.mubr.f32.vlgmr.msra.gmra.mrb[16].mxu1 %v6919_v21 }
 0x6fc   :  { %13512 = vmatprep.mubr.msk.f32.mxu1 %vm14707_vm1, %v14706_v28  ;;  %v8314_v48 = vand.u32 4294901760, %v8313_v38 }
 0x776   :  { %v4999_v13 = vpop.f32.mrb[12].mxu1 }
 0x777   :  { %v13335_v4 = vpop.f32.mrb[13].mxu1  ;;  %v5004_v15 = vsel %vm1326_vm2, %v4999_v13, 0 }
 0x778   :  { %v5073_v20 = vand.u32 4294901760, %v5004_v15 }
 0x77a   :  { %v5074_v21 = vsub.f32 %v5004_v15, %v5073_v20 }
 0x77c   :  { %v5075_v39 = vand.u32 4294901760, %v5074_v21 }
 0x77e   :  { %v5076_v52 = vsub.f32 %v5074_v21, %v5075_v39 }
 0x780   :  { %v5077_v5 = vand.u32 4294901760, %v5076_v52 }
 0x7a2   :  { %v5916_v55 = vpop.f32.mrb[14].mxu1 }
 0x7a3   :  { %v15422_v9 = vadd.f32 %v5916_v55, %v15181_v12  ;;  %v13407_v27 = vpop.f32.mrb[15].mxu1 }
 0x7a5   :  { %v5920_v46 = vsel %vm1779_vm4, %v15422_v9, -inf }
 0x7a6   :  { %5921 = vmax.xlane.f32.xlu1 %v5920_v46 }
 0x7af   :  { %v3619_v32 = vpop.f32.mrb[6].mxu0 }
 0x7b0   :  { %v3624_v11 = vsel %vm1326_vm2, %v3619_v32, 0  ;;  %v13233_v3 = vpop.f32.mrb[7].mxu0 }
 0x7b1   :  { %v3693_v33 = vand.u32 4294901760, %v3624_v11 }
 0x7b3   :  { %v3694_v43 = vsub.f32 %v3624_v11, %v3693_v33 }
 0x7b5   :  { %v3695_v59 = vand.u32 4294901760, %v3694_v43 }
 0x7b7   :  { %v3696_v10 = vsub.f32 %v3694_v43, %v3695_v59 }
 0x7b9   :  { %v3697_v19 = vand.u32 4294901760, %v3696_v10 }
 0x7bb   :  { %13239 = vmatmul.mubr.f32.vlgmr.msra.gmra.mrb[4].mxu0 %v3697_v19 }
 0x7bc   :  { %14103 = vmatpush3.bf16.msra.mxu0 %v15415_v58  ;;  %13245 = vmatprep.mubr.msk.f32.mxu0 %vm14707_vm1, %v14706_v28 }
 0x7bd   :  { %14104 = vmatprep.subr.bf16.mxu0 %v14711_v42 }
 0x7c3   :  { %13246 = vmatmul.mubr.f32.vlgmr.msra.gmra.mrb[4].mxu0 %v3693_v33 }
 0x7c4   :  { %14106 = vmatpush3.bf16.msra.mxu0 %v15417_v2  ;;  %13252 = vmatprep.mubr.msk.f32.mxu0 %vm14707_vm1, %v14706_v28 }
 0x7c5   :  { %14107 = vmatprep.subr.bf16.mxu0 %v14711_v42 }
 0x7cb   :  { %13253 = vmatmul.mubr.f32.vlgmr.msra.gmra.mrb[4].mxu0 %v3694_v43 }
 0x7cc   :  { %14109 = vmatpush3.bf16.msra.mxu0 %v15411_v50  ;;  %13259 = vmatprep.mubr.msk.f32.mxu0 %vm14707_vm1, %v14706_v28 }
 0x7cd   :  { %14110 = vmatprep.subr.bf16.mxu0 %v14711_v42 }
 0x7ce   :  { %v7295_v14 = vpop.f32.mrb[16].mxu1 }
 0x7cf   :  { %v14236_v37 = vadd.f32 %v7295_v14, %v15181_v12  ;;  %v13509_v47 = vpop.f32.mrb[17].mxu1 }
 0x7d1   :  { %v7299_v18 = vsel %vm1779_vm4, %v14236_v37, -inf }
 0x7d2   :  { %7300 = vmax.xlane.f32.xlu0 %v7299_v18  ;;  %v8229_v18 = vsel %vm1326_vm2, %v8226_v1, 0 }
 0x7d3   :  { %13260 = vmatmul.mubr.f32.vlgmr.msra.gmra.mrb[4].mxu0 %v3695_v59  ;;  %v15513_v17 = vand.u32 4294901760, %v8229_v18 }
 0x7d4   :  { %14112 = vmatpush3.bf16.msra.mxu0 %v15419_v8  ;;  %13266 = vmatprep.mubr.msk.f32.mxu0 %vm14707_vm1, %v14706_v28 }
 0x7d5   :  { %14113 = vmatprep.subr.bf16.mxu0 %v14711_v42  ;;  %v8300_v15 = vsub.f32 %v8229_v18, %v15513_v17 }
 0x7db   :  { %13267 = vmatmul.mubr.f32.vlgmr.msra.gmra.mrb[4].mxu0 %v3693_v33 }
 0x7dc   :  { %14115 = vmatpush3.bf16.msra.mxu0 %v15411_v50  ;;  %13273 = vmatprep.mubr.msk.f32.mxu0 %vm14707_vm1, %v14706_v28 }
 0x7dd   :  { %14116 = vmatprep.subr.bf16.mxu0 %v14711_v42 }
 0x7e3   :  { %13274 = vmatmul.mubr.f32.vlgmr.msra.gmra.mrb[4].mxu0 %v3693_v33 }
 0x7e4   :  { %14118 = vmatpush3.bf16.msra.mxu0 %v15450_v34  ;;  %13340 = vmatprep.mubr.msk.f32.mxu0 %vm14707_vm1, %v14706_v28 }
 0x7e5   :  { %14119 = vmatprep.subr.bf16.mxu0 %v14711_v42 }
 0x7eb   :  { %13341 = vmatmul.mubr.f32.vlgmr.msra.gmra.mrb[4].mxu0 %v5077_v5 }
 0x7ec   :  { %14121 = vmatpush3.bf16.msra.mxu0 %v15456_v62  ;;  %13347 = vmatprep.mubr.msk.f32.mxu0 %vm14707_vm1, %v14706_v28 }
 0x7ed   :  { %14122 = vmatprep.subr.bf16.mxu0 %v14711_v42 }
 0x7f3   :  { %13348 = vmatmul.mubr.f32.vlgmr.msra.gmra.mrb[4].mxu0 %v5073_v20 }
 0x7f4   :  { %14124 = vmatpush3.bf16.msra.mxu0 %v15462_v6  ;;  %13354 = vmatprep.mubr.msk.f32.mxu0 %vm14707_vm1, %v14706_v28 }
 0x7f5   :  { %14125 = vmatprep.subr.bf16.mxu0 %v14711_v42 }
 0x7fb   :  { %13355 = vmatmul.mubr.f32.vlgmr.msra.gmra.mrb[4].mxu0 %v5074_v21 }
 0x7fc   :  { %14127 = vmatpush3.bf16.msra.mxu0 %v15450_v34  ;;  %13361 = vmatprep.mubr.msk.f32.mxu0 %vm14707_vm1, %v14706_v28 }
 0x7fd   :  { %14128 = vmatprep.subr.bf16.mxu0 %v14711_v42 }
 0x803   :  { %13362 = vmatmul.mubr.f32.vlgmr.msra.gmra.mrb[4].mxu0 %v5075_v39 }
 0x804   :  { %14130 = vmatpush3.bf16.msra.mxu0 %v15472_v61  ;;  %13368 = vmatprep.mubr.msk.f32.mxu0 %vm14707_vm1, %v14706_v28 }
 0x805   :  { %14131 = vmatprep.subr.bf16.mxu0 %v14711_v42 }
 0x80b   :  { %13369 = vmatmul.mubr.f32.vlgmr.msra.gmra.mrb[4].mxu0 %v5073_v20 }
 0x80c   :  { %14133 = vmatpush3.bf16.msra.mxu0 %v15450_v34  ;;  %13375 = vmatprep.mubr.msk.f32.mxu0 %vm14707_vm1, %v14706_v28 }
 0x80d   :  { %13408 = vmatprep.subr.mxu0 %v14706_v28 }
 0x813   :  { %13376 = vmatmul.mubr.f32.vlgmr.msra.gmra.mrb[4].mxu0 %v5073_v20  ;;  %v8301_v20 = vand.u32 4294901760, %v8300_v15 }
 0x814   :  { %13410 = vmatprep.mubr.msk.f32.mxu0 %vm14707_vm1, %v14706_v28 }
 0x815   :  { %v8302_v35 = vsub.f32 %v8300_v15, %v8301_v20 }
 0x817   :  { %v8303_v39 = vand.u32 4294901760, %v8302_v35 }
 0x833   :  { %v5922_v53 = vpop.xlane.xlu1 %5921 }
 0x834   :  { %v5923_v57 = vsub.f32 %v15422_v9, %v5922_v53 }
 0x836   :  { %v5924_v13 = vmul.f32 1.442695, %v5923_v57 }
 0x85f   :  { %v7301_v7 = vpop.xlane.xlu0 %7300 }
 0x860   :  { %v7302_v31 = vsub.f32 %v14236_v37, %v7301_v7 }
 0x862   :  { %v7303_v54 = vmul.f32 1.442695, %v7302_v31 }
 0x864   :  { %14539 = vpow2.f32 %v7303_v54 }
 0x865   :  { %14541 = vpow2.f32 %v5924_v13  ;;  %v9609_v13 = vsel %vm1326_vm2, %v15489_v45, 0 }
 0x86e   :  { %v14540_v60 = vpop.eup %14539 }
 0x86f   :  { %v7305_v0 = vsel %vm1779_vm4, %v14540_v60, 0.0  ;;  %v15492_v4 = vpop.eup %14541 }
 0x870   :  { %7306 = vadd.xlane.f32.xlu0 %v7305_v0  ;;  %v5926_v55 = vsel %vm1779_vm4, %v15492_v4, 0.0 }
 0x886   :  { %7310 = vrot.lane.b32.xlu0 %v15145_v51, %s14708_s3 }
 0x88a   :  { %9607 = vrot.lane.b32.xlu0 %v15145_v51, %s14710_s5 }
 0x8a9   :  { %5927 = vadd.xlane.f32.xlu0 %v5926_v55  ;;  %v9679_v55 = vand.u32 4294901760, %v9609_v13 }
 0x8bf   :  { %5931 = vrot.lane.b32.xlu0 %v15147_v56, %s14715_s29 }
 0x8fd   :  { %v7307_v27 = vpop.xlane.xlu0 %7306 }
 0x8fe   :  { %14543 = vrcp.f32 %v7307_v27 }
 0x901   :  { %v7311_v46 = vpop.permute.xlu0 %7310 }
 0x902   :  { %v7317_v32 = vand.u32 4294901760, %v7311_v46 }
 0x904   :  { %13511 = vmatpush3.msra.mxu1 %v7317_v32  ;;  %v7394_v3 = vsub.f32 %v7311_v46, %v7317_v32  ;;  %v9680_v46 = vsub.f32 %v9609_v13, %v9679_v55 }
 0x905   :  { %13515 = vmatprep.subr.mxu1 %v14706_v28  ;;  %v9608_v24 = vpop.permute.xlu0 %9607 }
 0x906   :  { %v7395_v59 = vand.u32 4294901760, %v7394_v3 }
 0x908   :  { %v14544_v9 = vpop.eup %14543  ;;  %v7396_v14 = vsub.f32 %v7394_v3, %v7395_v59 }
 0x909   :  { %v7309_v11 = vmul.f32 %v14544_v9, %v14540_v60 }
 0x90a   :  { %v7397_v56 = vand.u32 4294901760, %v7396_v14 }
 0x90b   :  { %v7314_v33 = vsel %vm1779_vm4, %v7309_v11, 0 }
 0x90c   :  { %v7382_v43 = vand.u32 4294901760, %v7314_v33 }
 0x90e   :  { %v7383_v10 = vsub.f32 %v7314_v33, %v7382_v43 }
 0x910   :  { %v7384_v19 = vand.u32 4294901760, %v7383_v10 }
 0x912   :  { %v7385_v37 = vsub.f32 %v7383_v10, %v7384_v19 }
 0x914   :  { %v7386_v47 = vand.u32 4294901760, %v7385_v37 }
 0x916   :  { %13513 = vmatmul.mubr.f32.vlgmr.msra.gmra.mrb[18].mxu1 %v7386_v47 }
 0x917   :  { %13516 = vmatpush3.msra.mxu1 %v7397_v56  ;;  %13517 = vmatprep.mubr.msk.f32.mxu1 %vm14707_vm1, %v14706_v28 }
 0x918   :  { %13520 = vmatprep.subr.mxu1 %v14706_v28 }
 0x91e   :  { %13518 = vmatmul.mubr.f32.vlgmr.msra.gmra.mrb[18].mxu1 %v7382_v43 }
 0x91f   :  { %13521 = vmatpush3.msra.mxu1 %v7394_v3  ;;  %13522 = vmatprep.mubr.msk.f32.mxu1 %vm14707_vm1, %v14706_v28 }
 0x920   :  { %13525 = vmatprep.subr.mxu1 %v14706_v28 }
 0x926   :  { %13523 = vmatmul.mubr.f32.vlgmr.msra.gmra.mrb[18].mxu1 %v7383_v10  ;;  %v1319_v10 = vld [vmem:[#allocation10 + $0x38] sm:$0xff] }
 0x927   :  { %13526 = vmatpush3.msra.mxu1 %v7317_v32  ;;  %13527 = vmatprep.mubr.msk.f32.mxu1 %vm14707_vm1, %v14706_v28  ;;  %v6390_v14 = vand.u32 4294901760, %v1319_v10 }
 0x928   :  { %13530 = vmatprep.subr.mxu1 %v14706_v28 }
 0x929   :  { %v6472_v56 = vsub.f32 %v1319_v10, %v6390_v14  ;;  %v15691_v10 = vld [vmem:[%s15884_s7] ss:$0 sm:$0xff]  ;;  %s14716_s7 = smov [#allocation11]  }
 0x92a   :  { %s12371_s0 = sshll.u32 %s14716_s7, 4  ;;  %s12372_s0 = int_to_ptr.vmem [resolvable:$true] %s12371_s0 }
 0x92b   :  { %v6473_v16 = vand.u32 4294901760, %v6472_v56  ;;  %s14669_s9 = scalar_lea.vmem %s12372_s0, 256  ;;  %p14674_p13 = scmp.lt.s32.totalorder %s12372_s0, %s12372_s0 }
 0x92c   :  { %p14670_p12 = scmp.ne.s32.totalorder %s12372_s0, %s14669_s9  ;;  %p14675_p0 = scmp.lt.s32.totalorder %s14669_s9, %s14669_s9 }
 0x92e   :  { %13528 = vmatmul.mubr.f32.vlgmr.msra.gmra.mrb[18].mxu1 %v7384_v19  ;;  %p14676_p1 = por %p14675_p0, %p14674_p13 }
 0x92f   :  { %13531 = vmatpush3.msra.mxu1 %v7395_v59  ;;  %13532 = vmatprep.mubr.msk.f32.mxu1 %vm14707_vm1, %v14706_v28  ;;  %v1318_v59 = vld [vmem:[#allocation10 + $0x30] sm:$0xff] }
 0x930   :  { %13535 = vmatprep.subr.mxu1 %v14706_v28  ;;  %v6387_v19 = vand.u32 4294901760, %v1318_v59  ;;  %p14677_p2 = pnand %p14676_p1, %p14670_p12 }
 0x932   :  { %v15602_v37 = vpack.c.bf16 %v6390_v14, %v6387_v19  ;;  %v6465_v47 = vsub.f32 %v1318_v59, %v6387_v19 }
 0x934   :  { %v6466_v18 = vand.u32 4294901760, %v6465_v47 }
 0x936   :  { %13533 = vmatmul.mubr.f32.vlgmr.msra.gmra.mrb[18].mxu1 %v7382_v43  ;;  %v5928_v26 = vpop.xlane.xlu0 %5927 }
 0x937   :  { %13536 = vmatpush3.msra.mxu1 %v7317_v32  ;;  %14545 = vrcp.f32 %v5928_v26  ;;  %13537 = vmatprep.mubr.msk.f32.mxu1 %vm14707_vm1, %v14706_v28  ;;  %v9681_v32 = vand.u32 4294901760, %v9680_v46  ;;  %v15608_v26 = vpack.c.bf16 %v6472_v56, %v6465_v47 }
 0x938   :  { %13582 = vmatprep.subr.mxu1 %v14706_v28 }
 0x939   :  { %v9682_v11 = vsub.f32 %v9680_v46, %v9681_v32 }
 0x93a   :  { %v5932_v30 = vpop.permute.xlu0 %5931 }
 0x93b   :  { %v15523_v21 = vand.u32 4294901760, %v5932_v30  ;;  %v9683_v33 = vand.u32 4294901760, %v9682_v11 }
 0x93d   :  { %13409 = vmatpush3.msra.mxu0 %v15523_v21  ;;  %v6015_v5 = vsub.f32 %v5932_v30, %v15523_v21 }
 0x93e   :  { %13538 = vmatmul.mubr.f32.vlgmr.msra.gmra.mrb[18].mxu1 %v7382_v43  ;;  %13413 = vmatprep.subr.mxu0 %v14706_v28 }
 0x93f   :  { %13583 = vmatpush3.xpose.msra.mxu1 %v15516_v23  ;;  %13584 = vmatprep.mubr.msk.f32.mxu1 %vm14707_vm1, %v14706_v28  ;;  %v6016_v54 = vand.u32 4294901760, %v6015_v5 }
 0x940   :  { %13587 = vmatprep.subr.mxu1 %v14706_v28 }
 0x941   :  { %v14546_v44 = vpop.eup %14545  ;;  %v6017_v1 = vsub.f32 %v6015_v5, %v6016_v54 }
 0x942   :  { %v5930_v52 = vmul.f32 %v14546_v44, %v15492_v4  ;;  %13585 = vmatmul.mubr.f32.vlgmr.msra.gmra.mrb[20].mxu1 %v8303_v39  ;;  %v9611_v4 = vsel %vm1326_vm2, %v9608_v24, 0 }
 0x943   :  { %13588 = vmatpush3.xpose.msra.mxu1 %v8314_v48  ;;  %13589 = vmatprep.mubr.msk.f32.mxu1 %vm14707_vm1, %v14706_v28  ;;  %v6018_v57 = vand.u32 4294901760, %v6017_v1  ;;  %v9614_v27 = vand.u32 4294901760, %v9611_v4 }
 0x944   :  { %13592 = vmatprep.subr.mxu1 %v14706_v28  ;;  %v5935_v7 = vsel %vm1779_vm4, %v5930_v52, 0 }
 0x945   :  { %v15537_v31 = vand.u32 4294901760, %v5935_v7  ;;  %v9691_v45 = vsub.f32 %v9611_v4, %v9614_v27 }
 0x947   :  { %v6004_v60 = vsub.f32 %v5935_v7, %v15537_v31  ;;  %v9692_v9 = vand.u32 4294901760, %v9691_v45 }
 0x949   :  { %v6005_v0 = vand.u32 4294901760, %v6004_v60  ;;  %v9693_v3 = vsub.f32 %v9691_v45, %v9692_v9 }
 0x94a   :  { %13590 = vmatmul.mubr.f32.vlgmr.msra.gmra.mrb[20].mxu1 %v15513_v17 }
 0x94b   :  { %13593 = vmatpush3.xpose.msra.mxu1 %v8311_v25  ;;  %v6006_v40 = vsub.f32 %v6004_v60, %v6005_v0  ;;  %13594 = vmatprep.mubr.msk.f32.mxu1 %vm14707_vm1, %v14706_v28  ;;  %v9694_v43 = vand.u32 4294901760, %v9693_v3 }
 0x94c   :  { %13597 = vmatprep.subr.mxu1 %v14706_v28 }
 0x94d   :  { %v6007_v53 = vand.u32 4294901760, %v6006_v40 }
 0x94f   :  { %13411 = vmatmul.mubr.f32.vlgmr.msra.gmra.mrb[8].mxu0 %v6007_v53 }
 0x950   :  { %13414 = vmatpush3.msra.mxu0 %v6018_v57  ;;  %13415 = vmatprep.mubr.msk.f32.mxu0 %vm14707_vm1, %v14706_v28 }
 0x951   :  { %13418 = vmatprep.subr.mxu0 %v14706_v28 }
 0x952   :  { %13595 = vmatmul.mubr.f32.vlgmr.msra.gmra.mrb[20].mxu1 %v8300_v15 }
 0x953   :  { %13598 = vmatpush3.xpose.msra.mxu1 %v15516_v23  ;;  %13599 = vmatprep.mubr.msk.f32.mxu1 %vm14707_vm1, %v14706_v28 }
 0x954   :  { %13602 = vmatprep.subr.mxu1 %v14706_v28 }
 0x957   :  { %13416 = vmatmul.mubr.f32.vlgmr.msra.gmra.mrb[8].mxu0 %v15537_v31 }
 0x958   :  { %13419 = vmatpush3.msra.mxu0 %v6015_v5  ;;  %13420 = vmatprep.mubr.msk.f32.mxu0 %vm14707_vm1, %v14706_v28 }
 0x959   :  { %13423 = vmatprep.subr.mxu0 %v14706_v28 }
 0x95a   :  { %13600 = vmatmul.mubr.f32.vlgmr.msra.gmra.mrb[20].mxu1 %v8301_v20  ;;  %v15610_v20 = vpack.c.bf16 %v6473_v16, %v6466_v18 }
 0x95b   :  { %13603 = vmatpush3.xpose.msra.mxu1 %v8312_v29  ;;  %13604 = vmatprep.mubr.msk.f32.mxu1 %vm14707_vm1, %v14706_v28 }
 0x95c   :  { %13607 = vmatprep.subr.mxu1 %v14706_v28 }
 0x95f   :  { %13421 = vmatmul.mubr.f32.vlgmr.msra.gmra.mrb[8].mxu0 %v6004_v60 }
 0x960   :  { %13424 = vmatpush3.msra.mxu0 %v15523_v21  ;;  %13425 = vmatprep.mubr.msk.f32.mxu0 %vm14707_vm1, %v14706_v28 }
 0x961   :  { %13428 = vmatprep.subr.mxu0 %v14706_v28 }
 0x962   :  { %13605 = vmatmul.mubr.f32.vlgmr.msra.gmra.mrb[20].mxu1 %v15513_v17 }
 0x963   :  { %13608 = vmatpush3.xpose.msra.mxu1 %v15516_v23  ;;  %13609 = vmatprep.mubr.msk.f32.mxu1 %vm14707_vm1, %v14706_v28  ;;  %v6474_v23 = vsub.f32 %v6472_v56, %v6473_v16 }
 0x964   :  { %13684 = vmatprep.subr.mxu1 %v14706_v28 }
 0x965   :  { %v6475_v15 = vand.u32 4294901760, %v6474_v23 }
 0x967   :  { %13426 = vmatmul.mubr.f32.vlgmr.msra.gmra.mrb[8].mxu0 %v6005_v0 }
 0x968   :  { %13429 = vmatpush3.msra.mxu0 %v6016_v54  ;;  %13430 = vmatprep.mubr.msk.f32.mxu0 %vm14707_vm1, %v14706_v28 }
 0x969   :  { %13433 = vmatprep.subr.mxu0 %v14706_v28 }
 0x96a   :  { %13610 = vmatmul.mubr.f32.vlgmr.msra.gmra.mrb[20].mxu1 %v15513_v17  ;;  %v6467_v17 = vsub.f32 %v6465_v47, %v6466_v18 }
 0x96b   :  { %13685 = vmatpush3.xpose.msra.mxu1 %v9614_v27  ;;  %13686 = vmatprep.mubr.msk.f32.mxu1 %vm14707_vm1, %v14706_v28 }
 0x96c   :  { %13689 = vmatprep.subr.mxu1 %v14706_v28  ;;  %v6468_v24 = vand.u32 4294901760, %v6467_v17 }
 0x96e   :  { %13687 = vmatmul.mubr.f32.vlgmr.msra.gmra.mrb[22].mxu1 %v9683_v33  ;;  %v15606_v25 = vpack.c.bf16 %v6475_v15, %v6468_v24 }
 0x96f   :  { %13690 = vmatpush3.xpose.msra.mxu1 %v9694_v43  ;;  %13431 = vmatmul.mubr.f32.vlgmr.msra.gmra.mrb[8].mxu0 %v15537_v31 }
 0x970   :  { %13434 = vmatpush3.msra.mxu0 %v15523_v21  ;;  %13691 = vmatprep.mubr.msk.f32.mxu1 %vm14707_vm1, %v14706_v28 }
 0x971   :  { %13694 = vmatprep.subr.mxu1 %v14706_v28  ;;  %13435 = vmatprep.mubr.msk.f32.mxu0 %vm14707_vm1, %v14706_v28 }
 0x972   :  { %14134 = vmatprep.subr.bf16.mxu0 %v14711_v42 }
 0x976   :  { %13692 = vmatmul.mubr.f32.vlgmr.msra.gmra.mrb[22].mxu1 %v9679_v55 }
 0x977   :  { %13695 = vmatpush3.xpose.msra.mxu1 %v9691_v45  ;;  %13436 = vmatmul.mubr.f32.vlgmr.msra.gmra.mrb[8].mxu0 %v15537_v31 }
 0x978   :  { %13696 = vmatprep.mubr.msk.f32.mxu1 %vm14707_vm1, %v14706_v28  ;;  %13699 = vmatprep.subr.mxu1 %v14706_v28 }
 0x979   :  { %13442 = vmatprep.mubr.msk.f32.mxu0 %vm14707_vm1, %v14706_v28  ;;  %14136 = vmatpush3.bf16.msra.mxu0 %v15602_v37 }
 0x97a   :  { %14137 = vmatprep.subr.bf16.mxu0 %v14711_v42 }
 0x97e   :  { %13697 = vmatmul.mubr.f32.vlgmr.msra.gmra.mrb[22].mxu1 %v9680_v46 }
 0x97f   :  { %13700 = vmatpush3.xpose.msra.mxu1 %v9614_v27  ;;  %13701 = vmatprep.mubr.msk.f32.mxu1 %vm14707_vm1, %v14706_v28 }
 0x980   :  { %13704 = vmatprep.subr.mxu1 %v14706_v28 }
 0x986   :  { %13702 = vmatmul.mubr.f32.vlgmr.msra.gmra.mrb[22].mxu1 %v9681_v32 }
 0x987   :  { %13705 = vmatpush3.xpose.msra.mxu1 %v9692_v9  ;;  %13706 = vmatprep.mubr.msk.f32.mxu1 %vm14707_vm1, %v14706_v28 }
 0x988   :  { %13709 = vmatprep.subr.mxu1 %v14706_v28 }
 0x98e   :  { %13707 = vmatmul.mubr.f32.vlgmr.msra.gmra.mrb[22].mxu1 %v9679_v55 }
 0x98f   :  { %13710 = vmatpush3.xpose.msra.mxu1 %v9614_v27  ;;  %13711 = vmatprep.mubr.msk.f32.mxu1 %vm14707_vm1, %v14706_v28 }
 0x990   :  { %13714 = vmatprep.subr.mxu1 %v14706_v28 }
 0x996   :  { %13712 = vmatmul.mubr.f32.vlgmr.msra.gmra.mrb[22].mxu1 %v9679_v55 }
 0x997   :  { %13716 = vmatprep.mubr.msk.f32.mxu1 %vm14707_vm1, %v14706_v28 }
 0xa11   :  { %v7758_v29 = vpop.f32.mrb[18].mxu1 }
 0xa12   :  { %v13539_v30 = vpop.f32.mrb[19].mxu1  ;;  %v7763_v57 = vsel %vm1326_vm2, %v7758_v29, 0 }
 0xa13   :  { %v7832_v13 = vand.u32 4294901760, %v7763_v57 }
 0xa15   :  { %v7833_v4 = vsub.f32 %v7763_v57, %v7832_v13 }
 0xa17   :  { %v7834_v55 = vand.u32 4294901760, %v7833_v4 }
 0xa19   :  { %v7835_v27 = vsub.f32 %v7833_v4, %v7834_v55 }
 0xa1b   :  { %v7836_v46 = vand.u32 4294901760, %v7835_v27 }
 0xa3d   :  { %v8675_v21 = vpop.f32.mrb[20].mxu1 }
 0xa3e   :  { %v15613_v35 = vadd.f32 %v8675_v21, %v15181_v12  ;;  %v13611_v38 = vpop.f32.mrb[21].mxu1 }
 0xa40   :  { %v8679_v39 = vsel %vm1779_vm4, %v15613_v35, -inf }
 0xa41   :  { %8680 = vmax.xlane.f32.xlu0 %v8679_v39 }
 0xa4a   :  { %v6379_v44 = vpop.f32.mrb[8].mxu0 }
 0xa4b   :  { %v6384_v48 = vsel %vm1326_vm2, %v6379_v44, 0  ;;  %v13437_v52 = vpop.f32.mrb[9].mxu0 }
 0xa4c   :  { %v6453_v5 = vand.u32 4294901760, %v6384_v48 }
 0xa4e   :  { %v6454_v7 = vsub.f32 %v6384_v48, %v6453_v5 }
 0xa50   :  { %v6455_v31 = vand.u32 4294901760, %v6454_v7 }
 0xa52   :  { %v6456_v54 = vsub.f32 %v6454_v7, %v6455_v31 }
 0xa54   :  { %v6457_v60 = vand.u32 4294901760, %v6456_v54 }
 0xa56   :  { %13443 = vmatmul.mubr.f32.vlgmr.msra.gmra.mrb[4].mxu0 %v6457_v60 }
 0xa57   :  { %8690 = vrot.lane.b32.xlu0 %v15145_v51, %s14714_s27  ;;  %14139 = vmatpush3.bf16.msra.mxu0 %v15606_v25 }
 0xa58   :  { %13449 = vmatprep.mubr.msk.f32.mxu0 %vm14707_vm1, %v14706_v28  ;;  %14140 = vmatprep.subr.bf16.mxu0 %v14711_v42 }
 0xa5e   :  { %13450 = vmatmul.mubr.f32.vlgmr.msra.gmra.mrb[4].mxu0 %v6453_v5 }
 0xa5f   :  { %14142 = vmatpush3.bf16.msra.mxu0 %v15608_v26  ;;  %13456 = vmatprep.mubr.msk.f32.mxu0 %vm14707_vm1, %v14706_v28 }
 0xa60   :  { %14143 = vmatprep.subr.bf16.mxu0 %v14711_v42 }
 0xa66   :  { %13457 = vmatmul.mubr.f32.vlgmr.msra.gmra.mrb[4].mxu0 %v6454_v7 }
 0xa67   :  { %14145 = vmatpush3.bf16.msra.mxu0 %v15602_v37  ;;  %13463 = vmatprep.mubr.msk.f32.mxu0 %vm14707_vm1, %v14706_v28 }
 0xa68   :  { %14146 = vmatprep.subr.bf16.mxu0 %v14711_v42 }
 0xa69   :  { %v10055_v0 = vpop.f32.mrb[22].mxu1 }
 0xa6a   :  { %v14239_v1 = vadd.f32 %v10055_v0, %v15181_v12  ;;  %v13713_v40 = vpop.f32.mrb[23].mxu1 }
 0xa6c   :  { %v10059_v53 = vsel %vm1779_vm4, %v14239_v1, -inf }
 0xa6d   :  { %10060 = vmax.xlane.f32.xlu1 %v10059_v53 }
 0xa6e   :  { %13464 = vmatmul.mubr.f32.vlgmr.msra.gmra.mrb[4].mxu0 %v6455_v31 }
 0xa6f   :  { %14148 = vmatpush3.bf16.msra.mxu0 %v15610_v20  ;;  %13470 = vmatprep.mubr.msk.f32.mxu0 %vm14707_vm1, %v14706_v28 }
 0xa70   :  { %14149 = vmatprep.subr.bf16.mxu0 %v14711_v42 }
 0xa76   :  { %13471 = vmatmul.mubr.f32.vlgmr.msra.gmra.mrb[4].mxu0 %v6453_v5 }
 0xa77   :  { %14151 = vmatpush3.bf16.msra.mxu0 %v15602_v37  ;;  %13477 = vmatprep.mubr.msk.f32.mxu0 %vm14707_vm1, %v14706_v28 }
 0xa78   :  { %14152 = vmatprep.subr.bf16.mxu0 %v14711_v42 }
 0xa7e   :  { %13478 = vmatmul.mubr.f32.vlgmr.msra.gmra.mrb[4].mxu0 %v6453_v5 }
 0xa7f   :  { %14154 = vmatpush3.bf16.msra.mxu0 %v15249_v22  ;;  %13544 = vmatprep.mubr.msk.f32.mxu0 %vm14707_vm1, %v14706_v28 }
 0xa80   :  { %14155 = vmatprep.subr.bf16.mxu0 %v14711_v42 }
 0xa82   :  { %13545 = vmatmul.mubr.f32.vlgmr.msra.gmra.mrb[10].mxu0 %v7836_v46 }
 0xa83   :  { %14157 = vmatpush3.bf16.msra.mxu0 %v15254_v36  ;;  %13551 = vmatprep.mubr.msk.f32.mxu0 %vm14707_vm1, %v14706_v28 }
 0xa84   :  { %14158 = vmatprep.subr.bf16.mxu0 %v14711_v42 }
 0xa8a   :  { %13552 = vmatmul.mubr.f32.vlgmr.msra.gmra.mrb[10].mxu0 %v7832_v13 }
 0xa8b   :  { %14160 = vmatpush3.bf16.msra.mxu0 %v15256_v41  ;;  %13558 = vmatprep.mubr.msk.f32.mxu0 %vm14707_vm1, %v14706_v28 }
 0xa8c   :  { %14161 = vmatprep.subr.bf16.mxu0 %v14711_v42 }
 0xa92   :  { %13559 = vmatmul.mubr.f32.vlgmr.msra.gmra.mrb[10].mxu0 %v7833_v4 }
 0xa93   :  { %14163 = vmatpush3.bf16.msra.mxu0 %v15249_v22  ;;  %13565 = vmatprep.mubr.msk.f32.mxu0 %vm14707_vm1, %v14706_v28 }
 0xa94   :  { %14164 = vmatprep.subr.bf16.mxu0 %v14711_v42 }
 0xa9a   :  { %13566 = vmatmul.mubr.f32.vlgmr.msra.gmra.mrb[10].mxu0 %v7834_v55 }
 0xa9b   :  { %14166 = vmatpush3.bf16.msra.mxu0 %v15258_v63  ;;  %13572 = vmatprep.mubr.msk.f32.mxu0 %vm14707_vm1, %v14706_v28 }
 0xa9c   :  { %14167 = vmatprep.subr.bf16.mxu0 %v14711_v42 }
 0xaa2   :  { %13573 = vmatmul.mubr.f32.vlgmr.msra.gmra.mrb[10].mxu0 %v7832_v13 }
 0xaa3   :  { %14169 = vmatpush3.bf16.msra.mxu0 %v15249_v22  ;;  %13579 = vmatprep.mubr.msk.f32.mxu0 %vm14707_vm1, %v14706_v28 }
 0xaa4   :  { %13612 = vmatprep.subr.mxu0 %v14706_v28 }
 0xaaa   :  { %13580 = vmatmul.mubr.f32.vlgmr.msra.gmra.mrb[10].mxu0 %v7832_v13 }
 0xaab   :  { %13614 = vmatprep.mubr.msk.f32.mxu0 %vm14707_vm1, %v14706_v28 }
 0xace   :  { %v8681_v36 = vpop.xlane.xlu0 %8680 }
 0xacf   :  { %v8682_v3 = vsub.f32 %v15613_v35, %v8681_v36 }
 0xad1   :  { %v8683_v33 = vmul.f32 1.442695, %v8682_v3 }
 0xad2   :  { %v15669_v41 = vpop.permute.xlu0 %8690 }
 0xad3   :  { %v15672_v63 = vand.u32 4294901760, %v15669_v41 }
 0xad5   :  { %13613 = vmatpush3.msra.mxu0 %v15672_v63  ;;  %v8774_v46 = vsub.f32 %v15669_v41, %v15672_v63 }
 0xad6   :  { %13617 = vmatprep.subr.mxu0 %v14706_v28 }
 0xafa   :  { %v10061_v22 = vpop.xlane.xlu1 %10060 }
 0xafb   :  { %v10062_v45 = vsub.f32 %v14239_v1, %v10061_v22 }
 0xafd   :  { %v10063_v32 = vmul.f32 1.442695, %v10062_v45 }
 0xaff   :  { %14547 = vpow2.f32 %v10063_v32  ;;  %v8775_v32 = vand.u32 4294901760, %v8774_v46 }
 0xb00   :  { %14549 = vpow2.f32 %v8683_v33 }
 0xb01   :  { %v8776_v3 = vsub.f32 %v8774_v46, %v8775_v32 }
 0xb03   :  { %v8777_v41 = vand.u32 4294901760, %v8776_v3 }
 0xb09   :  { %v14548_v9 = vpop.eup %14547 }
 0xb0a   :  { %v10065_v11 = vsel %vm1779_vm4, %v14548_v9, 0.0  ;;  %v15684_v43 = vpop.eup %14549 }
 0xb0b   :  { %10066 = vadd.xlane.f32.xlu1 %v10065_v11  ;;  %v8685_v59 = vsel %vm1779_vm4, %v15684_v43, 0.0 }
 0xb1c   :  { %10070 = vrot.lane.b32.xlu1 %v15145_v51, %s14712_s25 }
 0xb20   :  { %10985 = vrot.lane.b32.xlu1 %v15136_v49, %s14713_s26 }
 0xb24   :  { %10987 = vrot.lane.b32.xlu1 %v15145_v51, %s14713_s26 }
 0xb48   :  { %8686 = vadd.xlane.f32.xlu1 %v8685_v59 }
 0xb51   :  { %v6841_v19 = vpop.f32.mrb[4].mxu0 }
 0xb52   :  { %v14232_v49 = vadd.f32 %v15691_v10, %v6841_v19  ;;  %v13479_v14 = vpop.f32.mrb[5].mxu0 }
 0xb54   :  { %6846 = vst.msk [vmem:[#allocation11] sm:$0xff] %vm117_vm0, %v14232_v49 }
 0xb98   :  { %v10067_v47 = vpop.xlane.xlu1 %10066 }
 0xb99   :  { %14551 = vrcp.f32 %v10067_v47 }
 0xb9c   :  { %v10071_v56 = vpop.permute.xlu1 %10070 }
 0xb9d   :  { %v10077_v18 = vand.u32 4294901760, %v10071_v56 }
 0xb9f   :  { %13715 = vmatpush3.msra.mxu1 %v10077_v18  ;;  %v10154_v23 = vsub.f32 %v10071_v56, %v10077_v18 }
 0xba0   :  { %13719 = vmatprep.subr.mxu1 %v14706_v28  ;;  %v10986_v48 = vpop.permute.xlu1 %10985 }
 0xba1   :  { %v10155_v29 = vand.u32 4294901760, %v10154_v23  ;;  %v10989_v5 = vsel %vm1326_vm2, %v10986_v48, 0 }
 0xba2   :  { %v15710_v31 = vand.u32 4294901760, %v10989_v5 }
 0xba3   :  { %v14552_v16 = vpop.eup %14551  ;;  %v10156_v35 = vsub.f32 %v10154_v23, %v10155_v29 }
 0xba4   :  { %v10069_v17 = vmul.f32 %v14552_v16, %v14548_v9  ;;  %v10988_v52 = vpop.permute.xlu1 %10987  ;;  %v11060_v60 = vsub.f32 %v10989_v5, %v15710_v31 }
 0xba5   :  { %v10157_v44 = vand.u32 4294901760, %v10156_v35  ;;  %v10991_v7 = vsel %vm1326_vm2, %v10988_v52, 0 }
 0xba6   :  { %v10074_v24 = vsel %vm1779_vm4, %v10069_v17, 0  ;;  %v10994_v54 = vand.u32 4294901760, %v10991_v7  ;;  %v11061_v1 = vand.u32 4294901760, %v11060_v60 }
 0xba7   :  { %v10142_v15 = vand.u32 4294901760, %v10074_v24 }
 0xba8   :  { %v11071_v0 = vsub.f32 %v10991_v7, %v10994_v54  ;;  %v11062_v57 = vsub.f32 %v11060_v60, %v11061_v1 }
 0xba9   :  { %v10143_v30 = vsub.f32 %v10074_v24, %v10142_v15 }
 0xbaa   :  { %v11072_v40 = vand.u32 4294901760, %v11071_v0  ;;  %v11063_v4 = vand.u32 4294901760, %v11062_v57 }
 0xbab   :  { %v10144_v21 = vand.u32 4294901760, %v10143_v30 }
 0xbac   :  { %v11073_v13 = vsub.f32 %v11071_v0, %v11072_v40 }
 0xbad   :  { %v10145_v38 = vsub.f32 %v10143_v30, %v10144_v21 }
 0xbae   :  { %v11074_v55 = vand.u32 4294901760, %v11073_v13 }
 0xbaf   :  { %v10146_v39 = vand.u32 4294901760, %v10145_v38 }
 0xbb1   :  { %13717 = vmatmul.mubr.f32.vlgmr.msra.gmra.mrb[24].mxu1 %v10146_v39 }
 0xbb2   :  { %13720 = vmatpush3.msra.mxu1 %v10157_v44  ;;  %13721 = vmatprep.mubr.msk.f32.mxu1 %vm14707_vm1, %v14706_v28 }
 0xbb3   :  { %13724 = vmatprep.subr.mxu1 %v14706_v28 }
 0xbb9   :  { %13722 = vmatmul.mubr.f32.vlgmr.msra.gmra.mrb[24].mxu1 %v10142_v15 }
 0xbba   :  { %13725 = vmatpush3.msra.mxu1 %v10154_v23  ;;  %13726 = vmatprep.mubr.msk.f32.mxu1 %vm14707_vm1, %v14706_v28 }
 0xbbb   :  { %13729 = vmatprep.subr.mxu1 %v14706_v28 }
 0xbc1   :  { %13727 = vmatmul.mubr.f32.vlgmr.msra.gmra.mrb[24].mxu1 %v10143_v30 }
 0xbc2   :  { %13730 = vmatpush3.msra.mxu1 %v10077_v18  ;;  %13731 = vmatprep.mubr.msk.f32.mxu1 %vm14707_vm1, %v14706_v28 }
 0xbc3   :  { %13734 = vmatprep.subr.mxu1 %v14706_v28 }
 0xbc9   :  { %13732 = vmatmul.mubr.f32.vlgmr.msra.gmra.mrb[24].mxu1 %v10144_v21 }
 0xbca   :  { %13735 = vmatpush3.msra.mxu1 %v10155_v29  ;;  %13736 = vmatprep.mubr.msk.f32.mxu1 %vm14707_vm1, %v14706_v28 }
 0xbcb   :  { %13739 = vmatprep.subr.mxu1 %v14706_v28 }
 0xbd1   :  { %13737 = vmatmul.mubr.f32.vlgmr.msra.gmra.mrb[24].mxu1 %v10142_v15 }
 0xbd2   :  { %13740 = vmatpush3.msra.mxu1 %v10077_v18  ;;  %13741 = vmatprep.mubr.msk.f32.mxu1 %vm14707_vm1, %v14706_v28 }
 0xbd3   :  { %13786 = vmatprep.subr.mxu1 %v14706_v28 }
 0xbd5   :  { %v8687_v53 = vpop.xlane.xlu1 %8686 }
 0xbd6   :  { %14553 = vrcp.f32 %v8687_v53 }
 0xbd9   :  { %13742 = vmatmul.mubr.f32.vlgmr.msra.gmra.mrb[24].mxu1 %v10142_v15 }
 0xbda   :  { %13787 = vmatpush3.xpose.msra.mxu1 %v10994_v54  ;;  %13788 = vmatprep.mubr.msk.f32.mxu1 %vm14707_vm1, %v14706_v28 }
 0xbdb   :  { %13791 = vmatprep.subr.mxu1 %v14706_v28 }
 0xbdd   :  { %13789 = vmatmul.mubr.f32.vlgmr.msra.gmra.mrb[26].mxu1 %v11063_v4 }
 0xbde   :  { %13792 = vmatpush3.xpose.msra.mxu1 %v11074_v55  ;;  %13793 = vmatprep.mubr.msk.f32.mxu1 %vm14707_vm1, %v14706_v28 }
 0xbdf   :  { %13796 = vmatprep.subr.mxu1 %v14706_v28 }
 0xbe0   :  { %v14554_v27 = vpop.eup %14553 }
 0xbe1   :  { %v8689_v36 = vmul.f32 %v14554_v27, %v15684_v43 }
 0xbe3   :  { %v8694_v22 = vsel %vm1779_vm4, %v8689_v36, 0 }
 0xbe4   :  { %v8762_v45 = vand.u32 4294901760, %v8694_v22 }
 0xbe5   :  { %13794 = vmatmul.mubr.f32.vlgmr.msra.gmra.mrb[26].mxu1 %v15710_v31 }
 0xbe6   :  { %13797 = vmatpush3.xpose.msra.mxu1 %v11071_v0  ;;  %13798 = vmatprep.mubr.msk.f32.mxu1 %vm14707_vm1, %v14706_v28  ;;  %v8763_v9 = vsub.f32 %v8694_v22, %v8762_v45 }
 0xbe7   :  { %13801 = vmatprep.subr.mxu1 %v14706_v28 }
 0xbe8   :  { %v8764_v11 = vand.u32 4294901760, %v8763_v9 }
 0xbea   :  { %v8765_v33 = vsub.f32 %v8763_v9, %v8764_v11 }
 0xbec   :  { %v8766_v59 = vand.u32 4294901760, %v8765_v33 }
 0xbed   :  { %13799 = vmatmul.mubr.f32.vlgmr.msra.gmra.mrb[26].mxu1 %v11060_v60 }
 0xbee   :  { %13802 = vmatpush3.xpose.msra.mxu1 %v10994_v54  ;;  %13615 = vmatmul.mubr.f32.vlgmr.msra.gmra.mrb[12].mxu0 %v8766_v59 }
 0xbef   :  { %13618 = vmatpush3.msra.mxu0 %v8777_v41  ;;  %13803 = vmatprep.mubr.msk.f32.mxu1 %vm14707_vm1, %v14706_v28 }
 0xbf0   :  { %13806 = vmatprep.subr.mxu1 %v14706_v28  ;;  %13619 = vmatprep.mubr.msk.f32.mxu0 %vm14707_vm1, %v14706_v28 }
 0xbf1   :  { %13622 = vmatprep.subr.mxu0 %v14706_v28 }
 0xbf5   :  { %13804 = vmatmul.mubr.f32.vlgmr.msra.gmra.mrb[26].mxu1 %v11061_v1 }
 0xbf6   :  { %13807 = vmatpush3.xpose.msra.mxu1 %v11072_v40  ;;  %13620 = vmatmul.mubr.f32.vlgmr.msra.gmra.mrb[12].mxu0 %v8762_v45 }
 0xbf7   :  { %13623 = vmatpush3.msra.mxu0 %v8774_v46  ;;  %13808 = vmatprep.mubr.msk.f32.mxu1 %vm14707_vm1, %v14706_v28 }
 0xbf8   :  { %13811 = vmatprep.subr.mxu1 %v14706_v28  ;;  %13624 = vmatprep.mubr.msk.f32.mxu0 %vm14707_vm1, %v14706_v28 }
 0xbf9   :  { %13627 = vmatprep.subr.mxu0 %v14706_v28 }
 0xbfd   :  { %13809 = vmatmul.mubr.f32.vlgmr.msra.gmra.mrb[26].mxu1 %v15710_v31 }
 0xbfe   :  { %13812 = vmatpush3.xpose.msra.mxu1 %v10994_v54  ;;  %13625 = vmatmul.mubr.f32.vlgmr.msra.gmra.mrb[12].mxu0 %v8763_v9 }
 0xbff   :  { %13628 = vmatpush3.msra.mxu0 %v15672_v63  ;;  %13813 = vmatprep.mubr.msk.f32.mxu1 %vm14707_vm1, %v14706_v28 }
 0xc00   :  { %13629 = vmatprep.mubr.msk.f32.mxu0 %vm14707_vm1, %v14706_v28  ;;  %13632 = vmatprep.subr.mxu0 %v14706_v28 }
 0xc05   :  { %13814 = vmatmul.mubr.f32.vlgmr.msra.gmra.mrb[26].mxu1 %v15710_v31 }
 0xc06   :  { %13630 = vmatmul.mubr.f32.vlgmr.msra.gmra.mrb[12].mxu0 %v8764_v11 }
 0xc07   :  { %13633 = vmatpush3.msra.mxu0 %v8775_v32  ;;  %13634 = vmatprep.mubr.msk.f32.mxu0 %vm14707_vm1, %v14706_v28 }
 0xc08   :  { %13637 = vmatprep.subr.mxu0 %v14706_v28 }
 0xc0e   :  { %13635 = vmatmul.mubr.f32.vlgmr.msra.gmra.mrb[12].mxu0 %v8762_v45 }
 0xc0f   :  { %13638 = vmatpush3.msra.mxu0 %v15672_v63  ;;  %13639 = vmatprep.mubr.msk.f32.mxu0 %vm14707_vm1, %v14706_v28 }
 0xc10   :  { %14170 = vmatprep.subr.bf16.mxu0 %v14711_v42 }
 0xc16   :  { %13640 = vmatmul.mubr.f32.vlgmr.msra.gmra.mrb[12].mxu0 %v8762_v45 }
 0xc17   :  { %14172 = vmatpush3.bf16.msra.mxu0 %v15411_v50  ;;  %13646 = vmatprep.mubr.msk.f32.mxu0 %vm14707_vm1, %v14706_v28 }
 0xc18   :  { %14173 = vmatprep.subr.bf16.mxu0 %v14711_v42 }
 0xcac   :  { %v10518_v43 = vpop.f32.mrb[24].mxu1 }
 0xcad   :  { %v13743_v19 = vpop.f32.mrb[25].mxu1 }
 0xcd8   :  { %v11435_v49 = vpop.f32.mrb[26].mxu1 }
 0xcd9   :  { %v15763_v14 = vadd.f32 %v11435_v49, %v15181_v12  ;;  %v13815_v63 = vpop.f32.mrb[27].mxu1 }
 0xcdb   :  { %v11439_v47 = vsel %vm1779_vm4, %v15763_v14, -inf }
 0xcdc   :  { %11440 = vmax.xlane.f32.xlu1 %v11439_v47 }
 0xce9   :  { %v9138_v56 = vpop.f32.mrb[12].mxu0 }
 0xcea   :  { %v9143_v18 = vsel %vm1326_vm2, %v9138_v56, 0  ;;  %v13641_v16 = vpop.f32.mrb[13].mxu0 }
 0xceb   :  { %v9212_v17 = vand.u32 4294901760, %v9143_v18 }
 0xced   :  { %v9213_v23 = vsub.f32 %v9143_v18, %v9212_v17  ;;  %11450 = vrot.lane.b32.xlu1 %v15145_v51, %s14715_s29  ;;  %v10523_v51 = vsel %vm1326_vm2, %v10518_v43, 0 }
 0xcee   :  { %v10592_v12 = vand.u32 4294901760, %v10523_v51 }
 0xcef   :  { %v9214_v24 = vand.u32 4294901760, %v9213_v23 }
 0xcf1   :  { %v9215_v15 = vsub.f32 %v9213_v23, %v9214_v24 }
 0xcf3   :  { %v9216_v29 = vand.u32 4294901760, %v9215_v15 }
 0xcf5   :  { %13647 = vmatmul.mubr.f32.vlgmr.msra.gmra.mrb[10].mxu0 %v9216_v29 }
 0xcf6   :  { %14175 = vmatpush3.bf16.msra.mxu0 %v15415_v58  ;;  %13653 = vmatprep.mubr.msk.f32.mxu0 %vm14707_vm1, %v14706_v28  ;;  %v10593_v58 = vsub.f32 %v10523_v51, %v10592_v12 }
 0xcf7   :  { %14176 = vmatprep.subr.bf16.mxu0 %v14711_v42 }
 0xcfd   :  { %13654 = vmatmul.mubr.f32.vlgmr.msra.gmra.mrb[10].mxu0 %v9212_v17 }
 0xcfe   :  { %14178 = vmatpush3.bf16.msra.mxu0 %v15417_v2  ;;  %13660 = vmatprep.mubr.msk.f32.mxu0 %vm14707_vm1, %v14706_v28  ;;  %v10594_v2 = vand.u32 4294901760, %v10593_v58 }
 0xcff   :  { %14179 = vmatprep.subr.bf16.mxu0 %v14711_v42 }
 0xd05   :  { %13661 = vmatmul.mubr.f32.vlgmr.msra.gmra.mrb[10].mxu0 %v9213_v23 }
 0xd06   :  { %14181 = vmatpush3.bf16.msra.mxu0 %v15411_v50  ;;  %13667 = vmatprep.mubr.msk.f32.mxu0 %vm14707_vm1, %v14706_v28 }
 0xd07   :  { %14182 = vmatprep.subr.bf16.mxu0 %v14711_v42 }
 0xd0d   :  { %13668 = vmatmul.mubr.f32.vlgmr.msra.gmra.mrb[10].mxu0 %v9214_v24 }
 0xd0e   :  { %14184 = vmatpush3.bf16.msra.mxu0 %v15419_v8  ;;  %13674 = vmatprep.mubr.msk.f32.mxu0 %vm14707_vm1, %v14706_v28  ;;  %v10595_v8 = vsub.f32 %v10593_v58, %v10594_v2 }
 0xd0f   :  { %14185 = vmatprep.subr.bf16.mxu0 %v14711_v42 }
 0xd10   :  { %v10596_v30 = vand.u32 4294901760, %v10595_v8 }
 0xd15   :  { %13675 = vmatmul.mubr.f32.vlgmr.msra.gmra.mrb[10].mxu0 %v9212_v17 }
 0xd16   :  { %14187 = vmatpush3.bf16.msra.mxu0 %v15411_v50  ;;  %13681 = vmatprep.mubr.msk.f32.mxu0 %vm14707_vm1, %v14706_v28 }
 0xd17   :  { %14188 = vmatprep.subr.bf16.mxu0 %v14711_v42 }
 0xd1d   :  { %13682 = vmatmul.mubr.f32.vlgmr.msra.gmra.mrb[10].mxu0 %v9212_v17 }
 0xd1e   :  { %14190 = vmatpush3.bf16.msra.mxu0 %v15450_v34  ;;  %13748 = vmatprep.mubr.msk.f32.mxu0 %vm14707_vm1, %v14706_v28 }
 0xd1f   :  { %14191 = vmatprep.subr.bf16.mxu0 %v14711_v42 }
 0xd25   :  { %13749 = vmatmul.mubr.f32.vlgmr.msra.gmra.mrb[10].mxu0 %v10596_v30 }
 0xd26   :  { %14193 = vmatpush3.bf16.msra.mxu0 %v15456_v62  ;;  %13755 = vmatprep.mubr.msk.f32.mxu0 %vm14707_vm1, %v14706_v28 }
 0xd27   :  { %14194 = vmatprep.subr.bf16.mxu0 %v14711_v42 }
 0xd2d   :  { %13756 = vmatmul.mubr.f32.vlgmr.msra.gmra.mrb[10].mxu0 %v10592_v12 }
 0xd2e   :  { %14196 = vmatpush3.bf16.msra.mxu0 %v15462_v6  ;;  %13762 = vmatprep.mubr.msk.f32.mxu0 %vm14707_vm1, %v14706_v28 }
 0xd2f   :  { %14197 = vmatprep.subr.bf16.mxu0 %v14711_v42 }
 0xd35   :  { %13763 = vmatmul.mubr.f32.vlgmr.msra.gmra.mrb[10].mxu0 %v10593_v58 }
 0xd36   :  { %14199 = vmatpush3.bf16.msra.mxu0 %v15450_v34  ;;  %13769 = vmatprep.mubr.msk.f32.mxu0 %vm14707_vm1, %v14706_v28 }
 0xd37   :  { %14200 = vmatprep.subr.bf16.mxu0 %v14711_v42 }
 0xd3d   :  { %13770 = vmatmul.mubr.f32.vlgmr.msra.gmra.mrb[10].mxu0 %v10594_v2 }
 0xd3e   :  { %14202 = vmatpush3.bf16.msra.mxu0 %v15472_v61  ;;  %13776 = vmatprep.mubr.msk.f32.mxu0 %vm14707_vm1, %v14706_v28 }
 0xd3f   :  { %14203 = vmatprep.subr.bf16.mxu0 %v14711_v42 }
 0xd45   :  { %13777 = vmatmul.mubr.f32.vlgmr.msra.gmra.mrb[10].mxu0 %v10592_v12 }
 0xd46   :  { %14205 = vmatpush3.bf16.msra.mxu0 %v15450_v34  ;;  %13783 = vmatprep.mubr.msk.f32.mxu0 %vm14707_vm1, %v14706_v28 }
 0xd47   :  { %13816 = vmatprep.subr.mxu0 %v14706_v28 }
 0xd4d   :  { %13784 = vmatmul.mubr.f32.vlgmr.msra.gmra.mrb[10].mxu0 %v10592_v12 }
 0xd4e   :  { %13818 = vmatprep.mubr.msk.f32.mxu0 %vm14707_vm1, %v14706_v28 }
 0xd69   :  { %v11441_v50 = vpop.xlane.xlu1 %11440 }
 0xd6a   :  { %v11442_v62 = vsub.f32 %v15763_v14, %v11441_v50 }
 0xd6c   :  { %v11443_v6 = vmul.f32 1.442695, %v11442_v62 }
 0xd6d   :  { %v11451_v61 = vpop.permute.xlu1 %11450 }
 0xd6e   :  { %14555 = vpow2.f32 %v11443_v6  ;;  %v11457_v21 = vand.u32 4294901760, %v11451_v61 }
 0xd70   :  { %13817 = vmatpush3.msra.mxu0 %v11457_v21  ;;  %v11534_v44 = vsub.f32 %v11451_v61, %v11457_v21 }
 0xd71   :  { %13821 = vmatprep.subr.mxu0 %v14706_v28 }
 0xd72   :  { %v11535_v7 = vand.u32 4294901760, %v11534_v44 }
 0xd74   :  { %v11536_v60 = vsub.f32 %v11534_v44, %v11535_v7 }
 0xd76   :  { %v11537_v40 = vand.u32 4294901760, %v11536_v60 }
 0xd78   :  { %v14556_v34 = vpop.eup %14555 }
 0xd79   :  { %v11445_v35 = vsel %vm1779_vm4, %v14556_v34, 0.0 }
 0xd7a   :  { %11446 = vadd.xlane.f32.xlu0 %v11445_v35 }
 0xe07   :  { %v11447_v38 = vpop.xlane.xlu0 %11446 }
 0xe08   :  { %14557 = vrcp.f32 %v11447_v38 }
 0xe12   :  { %v14558_v39 = vpop.eup %14557 }
 0xe13   :  { %v11449_v48 = vmul.f32 %v14558_v39, %v14556_v34 }
 0xe15   :  { %v11454_v52 = vsel %vm1779_vm4, %v11449_v48, 0 }
 0xe16   :  { %v11522_v5 = vand.u32 4294901760, %v11454_v52 }
 0xe18   :  { %v11523_v31 = vsub.f32 %v11454_v52, %v11522_v5 }
 0xe1a   :  { %v11524_v54 = vand.u32 4294901760, %v11523_v31 }
 0xe1c   :  { %v11525_v0 = vsub.f32 %v11523_v31, %v11524_v54 }
 0xe1e   :  { %v11526_v1 = vand.u32 4294901760, %v11525_v0 }
 0xe20   :  { %13819 = vmatmul.mubr.f32.vlgmr.msra.gmra.mrb[14].mxu0 %v11526_v1 }
 0xe21   :  { %13822 = vmatpush3.msra.mxu0 %v11537_v40  ;;  %13823 = vmatprep.mubr.msk.f32.mxu0 %vm14707_vm1, %v14706_v28 }
 0xe22   :  { %13826 = vmatprep.subr.mxu0 %v14706_v28 }
 0xe28   :  { %13824 = vmatmul.mubr.f32.vlgmr.msra.gmra.mrb[14].mxu0 %v11522_v5 }
 0xe29   :  { %13827 = vmatpush3.msra.mxu0 %v11534_v44  ;;  %13828 = vmatprep.mubr.msk.f32.mxu0 %vm14707_vm1, %v14706_v28 }
 0xe2a   :  { %13831 = vmatprep.subr.mxu0 %v14706_v28 }
 0xe30   :  { %13829 = vmatmul.mubr.f32.vlgmr.msra.gmra.mrb[14].mxu0 %v11523_v31 }
 0xe31   :  { %13832 = vmatpush3.msra.mxu0 %v11457_v21  ;;  %13833 = vmatprep.mubr.msk.f32.mxu0 %vm14707_vm1, %v14706_v28 }
 0xe32   :  { %13836 = vmatprep.subr.mxu0 %v14706_v28 }
 0xe38   :  { %13834 = vmatmul.mubr.f32.vlgmr.msra.gmra.mrb[14].mxu0 %v11524_v54 }
 0xe39   :  { %13837 = vmatpush3.msra.mxu0 %v11535_v7  ;;  %13838 = vmatprep.mubr.msk.f32.mxu0 %vm14707_vm1, %v14706_v28 }
 0xe3a   :  { %13841 = vmatprep.subr.mxu0 %v14706_v28 }
 0xe40   :  { %13839 = vmatmul.mubr.f32.vlgmr.msra.gmra.mrb[14].mxu0 %v11522_v5 }
 0xe41   :  { %13842 = vmatpush3.msra.mxu0 %v11457_v21  ;;  %13843 = vmatprep.mubr.msk.f32.mxu0 %vm14707_vm1, %v14706_v28 }
 0xe42   :  { %14206 = vmatprep.subr.bf16.mxu0 %v14711_v42 }
 0xe48   :  { %13844 = vmatmul.mubr.f32.vlgmr.msra.gmra.mrb[14].mxu0 %v11522_v5 }
 0xe49   :  { %14208 = vmatpush3.bf16.msra.mxu0 %v15602_v37  ;;  %13850 = vmatprep.mubr.msk.f32.mxu0 %vm14707_vm1, %v14706_v28 }
 0xe4a   :  { %14209 = vmatprep.subr.bf16.mxu0 %v14711_v42 }
 0xf1b   :  { %v11898_v53 = vpop.f32.mrb[14].mxu0 }
 0xf1c   :  { %v11903_v57 = vsel %vm1326_vm2, %v11898_v53, 0  ;;  %v13845_v13 = vpop.f32.mrb[15].mxu0 }
 0xf1d   :  { %v11972_v4 = vand.u32 4294901760, %v11903_v57 }
 0xf1f   :  { %v11973_v55 = vsub.f32 %v11903_v57, %v11972_v4 }
 0xf21   :  { %v11974_v27 = vand.u32 4294901760, %v11973_v55 }
 0xf23   :  { %v11975_v46 = vsub.f32 %v11973_v55, %v11974_v27 }
 0xf25   :  { %v11976_v36 = vand.u32 4294901760, %v11975_v46 }
 0xf27   :  { %13851 = vmatmul.mubr.f32.vlgmr.msra.gmra.mrb[10].mxu0 %v11976_v36 }
 0xf28   :  { %14211 = vmatpush3.bf16.msra.mxu0 %v15606_v25  ;;  %13857 = vmatprep.mubr.msk.f32.mxu0 %vm14707_vm1, %v14706_v28 }
 0xf29   :  { %14212 = vmatprep.subr.bf16.mxu0 %v14711_v42 }
 0xf2f   :  { %13858 = vmatmul.mubr.f32.vlgmr.msra.gmra.mrb[10].mxu0 %v11972_v4 }
 0xf30   :  { %14214 = vmatpush3.bf16.msra.mxu0 %v15608_v26  ;;  %13864 = vmatprep.mubr.msk.f32.mxu0 %vm14707_vm1, %v14706_v28 }
 0xf31   :  { %14215 = vmatprep.subr.bf16.mxu0 %v14711_v42 }
 0xf37   :  { %13865 = vmatmul.mubr.f32.vlgmr.msra.gmra.mrb[10].mxu0 %v11973_v55 }
 0xf38   :  { %14217 = vmatpush3.bf16.msra.mxu0 %v15602_v37  ;;  %13871 = vmatprep.mubr.msk.f32.mxu0 %vm14707_vm1, %v14706_v28 }
 0xf39   :  { %14218 = vmatprep.subr.bf16.mxu0 %v14711_v42 }
 0xf3f   :  { %13872 = vmatmul.mubr.f32.vlgmr.msra.gmra.mrb[10].mxu0 %v11974_v27 }
 0xf40   :  { %14220 = vmatpush3.bf16.msra.mxu0 %v15610_v20  ;;  %13878 = vmatprep.mubr.msk.f32.mxu0 %vm14707_vm1, %v14706_v28 }
 0xf41   :  { %14221 = vmatprep.subr.bf16.mxu0 %v14711_v42 }
 0xf47   :  { %13879 = vmatmul.mubr.f32.vlgmr.msra.gmra.mrb[10].mxu0 %v11972_v4 }
 0xf48   :  { %14223 = vmatpush3.bf16.msra.mxu0 %v15602_v37  ;;  %13885 = vmatprep.mubr.msk.f32.mxu0 %vm14707_vm1, %v14706_v28 }
 0xf4f   :  { %13886 = vmatmul.mubr.f32.vlgmr.msra.gmra.mrb[10].mxu0 %v11972_v4 }
0x1022   :  { %v12360_v25 = vpop.f32.mrb[10].mxu0 }
0x1023   :  { %v14237_v26 = vadd.f32 %v15691_v10, %v12360_v25  ;;  %v13887_v22 = vpop.f32.mrb[11].mxu0 }
0x1025   :  { %12365 = vst.msk [vmem:[#allocation11 + $0x8] sm:$0xff] %vm117_vm0, %v14237_v26 }
0x1026   :  { %14680 = shalt.err (!%p14677_p2)
}
0x1027   :  { %s14681_s13 = scalar_lea.hbm %s15885_s8, 256 }
0x1028   :  { %p14682_p3 = scmp.ne.s32.totalorder %s15885_s8, %s14681_s13  ;;  %p14685_p4 = scmp.lt.u32.totalorder %s14681_s13, %s15885_s8 }
0x102a   :  { %p14687_p5 = pnand %p14685_p4, %p14682_p3 }
0x102c   :  { %14690 = shalt.err (!%p14687_p5)
}
0x102d   :  { %12377 = dma.vmem_to_hbm [thread:$0]  %s12372_s0, 256, %s15885_s8, [#allocation4], %s14701_s17, %s14701_s17, %s14702_s18  }
0x102e   :  { %14697 = dma.done.wait [#allocation4], 256  }
0x102f   :  { %14698 = vsyncadd [#allocation4], 4294967040 }
0x1030   :  { %12381 = vsyncpa [#allocation3], 1 }
0x1031   :  { %12382 = vsyncpa [#allocation6], 1 }
0x1032   :  { %12383 = vsyncpa [#allocation9], 1 }
0x1033   :  { %12384 = vsyncpa [#allocation4], 1 }

</bundles_post_ra>
